<compile_context>
chip_gen: v5e
topology: v5e:2x2
jax: 0.10.0
libtpu: 0.0.40
codegen_flags: <defaults>
</compile_context>

<pallas_src>
import functools

import jax
import jax.numpy as jnp
from jax.experimental import pallas as pl
from jax.experimental.pallas import tpu as pltpu


def _round_up(x, m):
    return ((x + m - 1) // m) * m


def _hybrid_kernel(
    x_ref,        # [TB, C_in*H*W]  bf16 lane-dense image slab
    wfeat_ref,    # [C_in, F]       f32  (backbone-stub projection, 2 KB)
    watt1_ref,    # [F, A_PAD]      bf16 (attention fc1, lane-padded)
    watt2_ref,    # [A_PAD, F]      bf16 (attention fc2, row-padded)
    wcls1_ref,    # [F, HID]        bf16
    wcls2_ref,    # [HID, C_PAD]    bf16 (classes padded to 128 lanes)
    rule_ref,     # [2*CR_PAD, F]   f32  rows [0:NC)=rule weights, [CR_PAD:CR_PAD+NC)=thresholds
    bias_ref,     # [8, B_SLAB]     f32  row0=b_feat row1=b_att1 row2=b_att2 row3=b_cls1 row4=b_cls2
    scat_ref,     # [CR_PAD, C_PAD] f32  one-hot scatter rows (VMEM-resident)
    out_ref,      # [TB, C_PAD]     f32
    *,
    nc,           # real number of rule / output classes
):
    c_in, f = wfeat_ref.shape
    hw = x_ref.shape[1] // c_in
    hid = wcls1_ref.shape[1]
    a_pad = watt1_ref.shape[1]
    c_pad = out_ref.shape[1]
    cr_pad = rule_ref.shape[0] // 2
    inv_hw = 1.0 / float(hw)

    b_feat = bias_ref[0:1, :f]                                 # [1, F]
    b_att1 = bias_ref[1:2, :a_pad]                             # [1, A_PAD] (zero-padded)
    b_att2 = bias_ref[2:3, :f]                                 # [1, F]
    b_cls1 = bias_ref[3:4, :hid]                               # [1, HID]
    b_cls2 = bias_ref[4:5, :c_pad]                             # [1, C_PAD] (zero-padded)

    # ---- backbone stand-in: per-channel GAP (lane add-reduce) + tiny VPU proj
    feats_acc = None
    for c in range(c_in):
        xc = x_ref[:, c * hw:(c + 1) * hw].astype(jnp.float32)       # [TB, HW]
        gap_c = jnp.sum(xc, axis=-1, keepdims=True) * inv_hw         # [TB, 1]
        term = gap_c * wfeat_ref[c:c + 1, :]                         # [TB, F]
        feats_acc = term if feats_acc is None else feats_acc + term
    features = feats_acc + b_feat                                    # [TB, F] f32

    # ---- attention: Linear -> ReLU -> Linear -> Sigmoid (bf16 MXU, f32 acc) --
    a1 = jnp.maximum(
        jnp.dot(features.astype(jnp.bfloat16), watt1_ref[...],
                preferred_element_type=jnp.float32) + b_att1,
        0.0,
    )                                                                # [TB, A_PAD]
    att = jax.nn.sigmoid(
        jnp.dot(a1.astype(jnp.bfloat16), watt2_ref[...],
                preferred_element_type=jnp.float32) + b_att2
    )                                                                # [TB, F]
    feats = features * att                                           # [TB, F] f32

    # ---- classifier: Linear -> ReLU -> Dropout(eval: identity) -> Linear ----
    h = jnp.maximum(
        jnp.dot(feats.astype(jnp.bfloat16), wcls1_ref[...],
                preferred_element_type=jnp.float32) + b_cls1,
        0.0,
    )                                                                # [TB, HID]
    logits = jnp.dot(h.astype(jnp.bfloat16), wcls2_ref[...],
                     preferred_element_type=jnp.float32) + b_cls2    # [TB, C_PAD]

    # ---- rule layer: prod_f sigmoid((x - t) * w) == 1 / prod_f (1 + exp(-z)) -
    # Loop over the real classes with a [TB, F] working set; one EUP exp per
    # element, lane-product via a roll+multiply tree, one approx reciprocal.
    out = logits
    for i in range(nc):
        w_i = rule_ref[i:i + 1, :]                                   # [1, F]
        t_i = rule_ref[cr_pad + i:cr_pad + i + 1, :]                 # [1, F]
        z = (feats - t_i) * w_i                                      # [TB, F]
        q = 1.0 + jnp.exp(-z)                                        # q >= 1 always
        shift = f // 2
        while shift >= 1:                                            # all-lane product
            q = q * pltpu.roll(q, shift=shift, axis=1)
            shift //= 2
        prod = jnp.minimum(q[:, 0:1], 3.0e38)                        # clamp inf -> ~FLT_MAX
        r = pl.reciprocal(prod, approx=True)                         # [TB, 1]
        out = out + r * scat_ref[i:i + 1, :]                         # scatter into lane i
    out_ref[...] = out


def hybrid_cnn_rules_forward(x, params):
    """x: [B, C_in, H, W] float32; params: dict of weights (see init_params)."""
    B, C_in, H, W = x.shape
    HW = H * W
    CHW = C_in * HW
    F = params["w_feat"].shape[1]
    F8 = params["w_att1"].shape[1]
    HID = params["w_cls1"].shape[1]
    NC = params["w_cls2"].shape[1]

    assert HW % 128 == 0, "lane-dense input slab needs H*W to be a multiple of 128"
    assert F % 128 == 0 and (F & (F - 1)) == 0, "roll-tree reduce needs power-of-two F"

    C_PAD = 128                          # lane-dense output (classes padded to 128)
    A_PAD = 128                          # attention hidden padded to full lanes
    CR_PAD = _round_up(max(NC, 1), 8)    # rule rows padded to a sublane group
    B_SLAB = max(F, HID, C_PAD, A_PAD)   # bias slab lane width
    assert NC <= C_PAD

    # Batch tile: large tiles amortize per-grid-step overhead; keep >=2 grid
    # steps for B > 16 so the parallel axis can shard across v7x's 2 TCs.
    # Multiple of 16 so the bf16 image slab tiles cleanly.  (Sweep 256-512.)
    if B <= 16:
        TB = 16
    else:
        TB = min(256, _round_up((B + 1) // 2, 16))
    B_pad = _round_up(B, TB)
    grid = (B_pad // TB,)

    # Lane-dense image slab, streamed in bf16 (halves HBM bytes; GAP restores
    # accuracy by accumulating the 256-sample mean in f32 inside the kernel).
    x_flat = x.reshape(B, CHW).astype(jnp.bfloat16)
    if B_pad != B:
        x_flat = jnp.pad(x_flat, ((0, B_pad - B), (0, 0)))

    # bf16 MXU weights (f32 accumulation in-kernel); attention lane/row padded
    # with zeros (zeros + ReLU keep numerics identical).
    w_att1_p = (jnp.zeros((F, A_PAD), jnp.float32)
                .at[:, :F8].set(params["w_att1"]).astype(jnp.bfloat16))
    w_att2_p = (jnp.zeros((A_PAD, F), jnp.float32)
                .at[:F8, :].set(params["w_att2"]).astype(jnp.bfloat16))
    w_cls1_b = params["w_cls1"].astype(jnp.bfloat16)
    w_cls2_p = (jnp.zeros((HID, C_PAD), jnp.float32)
                .at[:, :NC].set(params["w_cls2"]).astype(jnp.bfloat16))

    # One fused bias slab (f32) -> single operand / DMA descriptor.
    bias_slab = jnp.zeros((8, B_SLAB), jnp.float32)
    bias_slab = bias_slab.at[0, :F].set(params["b_feat"][0])
    bias_slab = bias_slab.at[1, :F8].set(params["b_att1"][0])
    bias_slab = bias_slab.at[2, :F].set(params["b_att2"][0])
    bias_slab = bias_slab.at[3, :HID].set(params["b_cls1"][0])
    bias_slab = bias_slab.at[4, :NC].set(params["b_cls2"][0])

    # Rule weights / thresholds fused into one sublane-aligned slab.
    rule_slab = jnp.zeros((2 * CR_PAD, F), jnp.float32)
    rule_slab = rule_slab.at[:NC, :].set(params["rule_w"])
    rule_slab = rule_slab.at[CR_PAD:CR_PAD + NC, :].set(params["rule_t"])

    # One-hot scatter rows (rule class i -> output lane i), hoisted out of the
    # kernel body and kept VMEM-resident.
    scat = jnp.zeros((CR_PAD, C_PAD), jnp.float32)
    scat = scat.at[jnp.arange(NC), jnp.arange(NC)].set(1.0)

    kernel = functools.partial(_hybrid_kernel, nc=NC)
    const = lambda i: (0, 0)    # weights: constant block index -> VMEM-resident

    flops = (2 * B_pad * (F * A_PAD + A_PAD * F + F * HID + HID * C_PAD + C_in * F)
             + B_pad * (CHW + NC * 4 * F + NC * 2 * C_PAD))
    transcendentals = B_pad * (F + NC * F + NC)
    bytes_accessed = (2 * B_pad * CHW                                   # bf16 images
                      + 2 * (F * A_PAD + A_PAD * F + F * HID + HID * C_PAD)
                      + 4 * (C_in * F + 8 * B_SLAB + 2 * CR_PAD * F + CR_PAD * C_PAD)
                      + 4 * B_pad * C_PAD)

    out_pad = pl.pallas_call(
        kernel,
        out_shape=jax.ShapeDtypeStruct((B_pad, C_PAD), jnp.float32),
        grid=grid,
        in_specs=[
            pl.BlockSpec((TB, CHW), lambda i: (i, 0)),       # image tile (bf16)
            pl.BlockSpec((C_in, F), const),                  # w_feat (f32, 2 KB)
            pl.BlockSpec((F, A_PAD), const),                 # w_att1 (bf16, padded)
            pl.BlockSpec((A_PAD, F), const),                 # w_att2 (bf16, padded)
            pl.BlockSpec((F, HID), const),                   # w_cls1 (bf16)
            pl.BlockSpec((HID, C_PAD), const),               # w_cls2 (bf16, padded)
            pl.BlockSpec((2 * CR_PAD, F), const),            # rule slab (f32)
            pl.BlockSpec((8, B_SLAB), const),                # bias slab (f32)
            pl.BlockSpec((CR_PAD, C_PAD), const),            # scatter rows (f32)
        ],
        out_specs=pl.BlockSpec((TB, C_PAD), lambda i: (i, 0)),
        compiler_params=pltpu.CompilerParams(
            dimension_semantics=("parallel",),
            vmem_limit_bytes=32 * 1024 * 1024,               # ~3 MB used at TB=256
        ),
        cost_estimate=pl.CostEstimate(
            flops=flops,
            transcendentals=transcendentals,
            bytes_accessed=bytes_accessed,
        ),
    )(x_flat, params["w_feat"], w_att1_p, w_att2_p, w_cls1_b, w_cls2_p,
      rule_slab, bias_slab, scat)

    # Slice off batch / class padding (pad lanes never leak into this view).
    return out_pad[:B, :NC]


def init_params(key, c_in=4, num_features=128, num_classes=7, hidden=512):
    """Deterministic parameter init mirroring the module's shapes."""
    ks = jax.random.split(key, 12)
    f8 = num_features // 8
    s = 0.1
    return {
        # backbone stub
        "w_feat": s * jax.random.normal(ks[0], (c_in, num_features), jnp.float32),
        "b_feat": s * jax.random.normal(ks[1], (1, num_features), jnp.float32),
        # attention MLP
        "w_att1": s * jax.random.normal(ks[2], (num_features, f8), jnp.float32),
        "b_att1": s * jax.random.normal(ks[3], (1, f8), jnp.float32),
        "w_att2": s * jax.random.normal(ks[4], (f8, num_features), jnp.float32),
        "b_att2": s * jax.random.normal(ks[5], (1, num_features), jnp.float32),
        # rule layer (torch.randn init in the module)
        "rule_w": jax.random.normal(ks[6], (num_classes, num_features), jnp.float32),
        "rule_t": jax.random.normal(ks[7], (num_classes, num_features), jnp.float32),
        # classifier head
        "w_cls1": s * jax.random.normal(ks[8], (num_features, hidden), jnp.float32),
        "b_cls1": s * jax.random.normal(ks[9], (1, hidden), jnp.float32),
        "w_cls2": s * jax.random.normal(ks[10], (hidden, num_classes), jnp.float32),
        "b_cls2": s * jax.random.normal(ks[11], (1, num_classes), jnp.float32),
    }


def _reference_forward(x, p, *, mxu_dtype=jnp.float32):
    """Pure-JAX reference with the module's semantics.

    mxu_dtype=bfloat16 mirrors the kernel's deliberate precision policy (bf16
    MXU operands, f32 accumulation, bf16 image stream) so the tight tolerance
    check isolates structural errors from precision policy; mxu_dtype=float32
    is the exact module math.
    """
    f32 = jnp.float32

    def dot(a, b):
        return jnp.dot(a.astype(mxu_dtype), b.astype(mxu_dtype),
                       preferred_element_type=f32)

    if mxu_dtype == jnp.bfloat16:
        x = x.astype(jnp.bfloat16).astype(f32)   # kernel streams images in bf16
    gap = jnp.mean(x, axis=(2, 3))
    features = gap @ p["w_feat"] + p["b_feat"]   # f32 VPU path in the kernel
    a1 = jnp.maximum(dot(features, p["w_att1"]) + p["b_att1"], 0.0)
    att = jax.nn.sigmoid(dot(a1, p["w_att2"]) + p["b_att2"])
    feats = features * att
    sat = jax.nn.sigmoid((feats[:, None, :] - p["rule_t"][None]) * p["rule_w"][None])
    rule_out = jnp.prod(sat, axis=-1)
    h = jnp.maximum(dot(feats, p["w_cls1"]) + p["b_cls1"], 0.0)
    logits = dot(h, p["w_cls2"]) + p["b_cls2"]
    return logits + rule_out


if __name__ == "__main__":
    key = jax.random.PRNGKey(0)
    k_x, k_p = jax.random.split(key)

    B, C_IN, H, W = 2, 4, 16, 16
    NUM_FEATURES, NUM_CLASSES = 128, 7

    x = jax.random.normal(k_x, (B, C_IN, H, W), jnp.float32)
    params = init_params(k_p, c_in=C_IN, num_features=NUM_FEATURES,
                         num_classes=NUM_CLASSES, hidden=512)

    out = jax.block_until_ready(hybrid_cnn_rules_forward(x, params))
    assert out.shape == (B, NUM_CLASSES), out.shape

    # Tight check vs a reference that mirrors the kernel's bf16-MXU / f32-acc
    # precision policy (isolates structural / rule-layer-rewrite errors).
    ref_bf16 = _reference_forward(x, params, mxu_dtype=jnp.bfloat16)
    assert jnp.allclose(out, ref_bf16, atol=1e-3, rtol=1e-3), (out, ref_bf16)

    # Sanity bound vs exact f32 module semantics (bf16 operand rounding adds
    # ~1e-3-scale deviation through the 512-wide classifier reduction).
    ref_f32 = _reference_forward(x, params)
    assert jnp.allclose(out, ref_f32, atol=5e-3, rtol=5e-3), (out, ref_f32)

    print("KERNEL_OK")
</pallas_src>

<mosaic_0001>
module attributes {stable_mosaic.version = 11 : i64} {
  func.func @_hybrid_kernel(%arg0: i32, %arg1: memref<16x1024xbf16, #tpu.memory_space<vmem>>, %arg2: memref<4x128xf32, #tpu.memory_space<vmem>>, %arg3: memref<128x128xbf16, #tpu.memory_space<vmem>>, %arg4: memref<128x128xbf16, #tpu.memory_space<vmem>>, %arg5: memref<128x512xbf16, #tpu.memory_space<vmem>>, %arg6: memref<512x128xbf16, #tpu.memory_space<vmem>>, %arg7: memref<16x128xf32, #tpu.memory_space<vmem>>, %arg8: memref<8x512xf32, #tpu.memory_space<vmem>>, %arg9: memref<8x128xf32, #tpu.memory_space<vmem>>, %arg10: memref<16x128xf32, #tpu.memory_space<vmem>>) attributes {dimension_semantics = [#tpu.dimension_semantics<parallel>], iteration_bounds = array<i64: 1>, scalar_prefetch = 0 : i64, scratch_operands = 0 : i64, tpu.core_type = #tpu.core_type<tc>, window_params = [{transform_indices = @transform_0, window_bounds = array<i64: 16, 1024>}, {pipeline_mode = #tpu.pipeline_mode<synchronous>, transform_indices = @transform_1, window_bounds = array<i64: 4, 128>}, {pipeline_mode = #tpu.pipeline_mode<synchronous>, transform_indices = @transform_2, window_bounds = array<i64: 128, 128>}, {pipeline_mode = #tpu.pipeline_mode<synchronous>, transform_indices = @transform_3, window_bounds = array<i64: 128, 128>}, {pipeline_mode = #tpu.pipeline_mode<synchronous>, transform_indices = @transform_4, window_bounds = array<i64: 128, 512>}, {pipeline_mode = #tpu.pipeline_mode<synchronous>, transform_indices = @transform_5, window_bounds = array<i64: 512, 128>}, {pipeline_mode = #tpu.pipeline_mode<synchronous>, transform_indices = @transform_6, window_bounds = array<i64: 16, 128>}, {pipeline_mode = #tpu.pipeline_mode<synchronous>, transform_indices = @transform_7, window_bounds = array<i64: 8, 512>}, {pipeline_mode = #tpu.pipeline_mode<synchronous>, transform_indices = @transform_8, window_bounds = array<i64: 8, 128>}, {transform_indices = @transform_9, window_bounds = array<i64: 16, 128>}]} {
    %c0 = arith.constant 0 : index
    %c0_0 = arith.constant 0 : index
    %0 = vector.load %arg8[%c0, %c0_0] : memref<8x512xf32, #tpu.memory_space<vmem>>, vector<1x128xf32>
    %c1 = arith.constant 1 : index
    %c0_1 = arith.constant 0 : index
    %1 = vector.load %arg8[%c1, %c0_1] : memref<8x512xf32, #tpu.memory_space<vmem>>, vector<1x128xf32>
    %c2 = arith.constant 2 : index
    %c0_2 = arith.constant 0 : index
    %2 = vector.load %arg8[%c2, %c0_2] : memref<8x512xf32, #tpu.memory_space<vmem>>, vector<1x128xf32>
    %c3 = arith.constant 3 : index
    %c0_3 = arith.constant 0 : index
    %3 = vector.load %arg8[%c3, %c0_3] : memref<8x512xf32, #tpu.memory_space<vmem>>, vector<1x512xf32>
    %c4 = arith.constant 4 : index
    %c0_4 = arith.constant 0 : index
    %4 = vector.load %arg8[%c4, %c0_4] : memref<8x512xf32, #tpu.memory_space<vmem>>, vector<1x128xf32>
    %c0_5 = arith.constant 0 : index
    %c0_6 = arith.constant 0 : index
    %5 = vector.load %arg1[%c0_5, %c0_6] : memref<16x1024xbf16, #tpu.memory_space<vmem>>, vector<16x256xbf16>
    %6 = arith.extf %5 : vector<16x256xbf16> to vector<16x256xf32>
    %cst = arith.constant dense<0.000000e+00> : vector<16xf32>
    %7 = vector.multi_reduction <add>, %6, %cst [1] : vector<16x256xf32> to vector<16xf32>
    %8 = vector.shape_cast %7 : vector<16xf32> to vector<16x1xf32>
    %cst_7 = arith.constant 3.906250e-03 : f32
    %9 = vector.broadcast %cst_7 : f32 to vector<16x1xf32>
    %10 = arith.mulf %8, %9 : vector<16x1xf32>
    %c0_8 = arith.constant 0 : index
    %c0_9 = arith.constant 0 : index
    %11 = vector.load %arg2[%c0_8, %c0_9] : memref<4x128xf32, #tpu.memory_space<vmem>>, vector<1x128xf32>
    %12 = vector.broadcast %10 : vector<16x1xf32> to vector<16x128xf32>
    %13 = vector.broadcast %11 : vector<1x128xf32> to vector<16x128xf32>
    %14 = arith.mulf %12, %13 : vector<16x128xf32>
    %c0_10 = arith.constant 0 : index
    %c256 = arith.constant 256 : index
    %15 = vector.load %arg1[%c0_10, %c256] : memref<16x1024xbf16, #tpu.memory_space<vmem>>, vector<16x256xbf16>
    %16 = arith.extf %15 : vector<16x256xbf16> to vector<16x256xf32>
    %cst_11 = arith.constant dense<0.000000e+00> : vector<16xf32>
    %17 = vector.multi_reduction <add>, %16, %cst_11 [1] : vector<16x256xf32> to vector<16xf32>
    %18 = vector.shape_cast %17 : vector<16xf32> to vector<16x1xf32>
    %cst_12 = arith.constant 3.906250e-03 : f32
    %19 = vector.broadcast %cst_12 : f32 to vector<16x1xf32>
    %20 = arith.mulf %18, %19 : vector<16x1xf32>
    %c1_13 = arith.constant 1 : index
    %c0_14 = arith.constant 0 : index
    %21 = vector.load %arg2[%c1_13, %c0_14] : memref<4x128xf32, #tpu.memory_space<vmem>>, vector<1x128xf32>
    %22 = vector.broadcast %20 : vector<16x1xf32> to vector<16x128xf32>
    %23 = vector.broadcast %21 : vector<1x128xf32> to vector<16x128xf32>
    %24 = arith.mulf %22, %23 : vector<16x128xf32>
    %25 = arith.addf %14, %24 : vector<16x128xf32>
    %c0_15 = arith.constant 0 : index
    %c512 = arith.constant 512 : index
    %26 = vector.load %arg1[%c0_15, %c512] : memref<16x1024xbf16, #tpu.memory_space<vmem>>, vector<16x256xbf16>
    %27 = arith.extf %26 : vector<16x256xbf16> to vector<16x256xf32>
    %cst_16 = arith.constant dense<0.000000e+00> : vector<16xf32>
    %28 = vector.multi_reduction <add>, %27, %cst_16 [1] : vector<16x256xf32> to vector<16xf32>
    %29 = vector.shape_cast %28 : vector<16xf32> to vector<16x1xf32>
    %cst_17 = arith.constant 3.906250e-03 : f32
    %30 = vector.broadcast %cst_17 : f32 to vector<16x1xf32>
    %31 = arith.mulf %29, %30 : vector<16x1xf32>
    %c2_18 = arith.constant 2 : index
    %c0_19 = arith.constant 0 : index
    %32 = vector.load %arg2[%c2_18, %c0_19] : memref<4x128xf32, #tpu.memory_space<vmem>>, vector<1x128xf32>
    %33 = vector.broadcast %31 : vector<16x1xf32> to vector<16x128xf32>
    %34 = vector.broadcast %32 : vector<1x128xf32> to vector<16x128xf32>
    %35 = arith.mulf %33, %34 : vector<16x128xf32>
    %36 = arith.addf %25, %35 : vector<16x128xf32>
    %c0_20 = arith.constant 0 : index
    %c768 = arith.constant 768 : index
    %37 = vector.load %arg1[%c0_20, %c768] : memref<16x1024xbf16, #tpu.memory_space<vmem>>, vector<16x256xbf16>
    %38 = arith.extf %37 : vector<16x256xbf16> to vector<16x256xf32>
    %cst_21 = arith.constant dense<0.000000e+00> : vector<16xf32>
    %39 = vector.multi_reduction <add>, %38, %cst_21 [1] : vector<16x256xf32> to vector<16xf32>
    %40 = vector.shape_cast %39 : vector<16xf32> to vector<16x1xf32>
    %cst_22 = arith.constant 3.906250e-03 : f32
    %41 = vector.broadcast %cst_22 : f32 to vector<16x1xf32>
    %42 = arith.mulf %40, %41 : vector<16x1xf32>
    %c3_23 = arith.constant 3 : index
    %c0_24 = arith.constant 0 : index
    %43 = vector.load %arg2[%c3_23, %c0_24] : memref<4x128xf32, #tpu.memory_space<vmem>>, vector<1x128xf32>
    %44 = vector.broadcast %42 : vector<16x1xf32> to vector<16x128xf32>
    %45 = vector.broadcast %43 : vector<1x128xf32> to vector<16x128xf32>
    %46 = arith.mulf %44, %45 : vector<16x128xf32>
    %47 = arith.addf %36, %46 : vector<16x128xf32>
    %48 = vector.broadcast %0 : vector<1x128xf32> to vector<16x128xf32>
    %49 = arith.addf %47, %48 : vector<16x128xf32>
    %50 = arith.truncf %49 : vector<16x128xf32> to vector<16x128xbf16>
    %c0_25 = arith.constant 0 : index
    %c0_26 = arith.constant 0 : index
    %51 = vector.load %arg3[%c0_25, %c0_26] : memref<128x128xbf16, #tpu.memory_space<vmem>>, vector<128x128xbf16>
    %cst_27 = arith.constant dense<0.000000e+00> : vector<16x128xf32>
    %52 = tpu.matmul %50, %51, %cst_27 {dimension_numbers = #tpu.dot_dimension_numbers<[1], [0], [0], [1], [0, 0, 1, 1], [], []>} : vector<16x128xbf16>, vector<128x128xbf16>, vector<16x128xf32> -> vector<16x128xf32>
    %53 = vector.broadcast %1 : vector<1x128xf32> to vector<16x128xf32>
    %54 = arith.addf %52, %53 : vector<16x128xf32>
    %cst_28 = arith.constant 0.000000e+00 : f32
    %55 = vector.broadcast %cst_28 : f32 to vector<16x128xf32>
    %56 = arith.maximumf %54, %55 : vector<16x128xf32>
    %57 = arith.truncf %56 : vector<16x128xf32> to vector<16x128xbf16>
    %c0_29 = arith.constant 0 : index
    %c0_30 = arith.constant 0 : index
    %58 = vector.load %arg4[%c0_29, %c0_30] : memref<128x128xbf16, #tpu.memory_space<vmem>>, vector<128x128xbf16>
    %cst_31 = arith.constant dense<0.000000e+00> : vector<16x128xf32>
    %59 = tpu.matmul %57, %58, %cst_31 {dimension_numbers = #tpu.dot_dimension_numbers<[1], [0], [0], [1], [0, 0, 1, 1], [], []>} : vector<16x128xbf16>, vector<128x128xbf16>, vector<16x128xf32> -> vector<16x128xf32>
    %60 = vector.broadcast %2 : vector<1x128xf32> to vector<16x128xf32>
    %61 = arith.addf %59, %60 : vector<16x128xf32>
    %62 = arith.negf %61 : vector<16x128xf32>
    %63 = math.exp %62 : vector<16x128xf32>
    %cst_32 = arith.constant 1.000000e+00 : f32
    %64 = vector.broadcast %cst_32 : f32 to vector<16x128xf32>
    %65 = arith.addf %64, %63 : vector<16x128xf32>
    %66 = arith.divf %64, %65 : vector<16x128xf32>
    %67 = arith.mulf %49, %66 : vector<16x128xf32>
    %68 = arith.truncf %67 : vector<16x128xf32> to vector<16x128xbf16>
    %c0_33 = arith.constant 0 : index
    %c0_34 = arith.constant 0 : index
    %69 = vector.load %arg5[%c0_33, %c0_34] : memref<128x512xbf16, #tpu.memory_space<vmem>>, vector<128x512xbf16>
    %cst_35 = arith.constant dense<0.000000e+00> : vector<16x512xf32>
    %70 = tpu.matmul %68, %69, %cst_35 {dimension_numbers = #tpu.dot_dimension_numbers<[1], [0], [0], [1], [0, 0, 1, 1], [], []>} : vector<16x128xbf16>, vector<128x512xbf16>, vector<16x512xf32> -> vector<16x512xf32>
    %71 = vector.broadcast %3 : vector<1x512xf32> to vector<16x512xf32>
    %72 = arith.addf %70, %71 : vector<16x512xf32>
    %cst_36 = arith.constant 0.000000e+00 : f32
    %73 = vector.broadcast %cst_36 : f32 to vector<16x512xf32>
    %74 = arith.maximumf %72, %73 : vector<16x512xf32>
    %75 = arith.truncf %74 : vector<16x512xf32> to vector<16x512xbf16>
    %c0_37 = arith.constant 0 : index
    %c0_38 = arith.constant 0 : index
    %76 = vector.load %arg6[%c0_37, %c0_38] : memref<512x128xbf16, #tpu.memory_space<vmem>>, vector<512x128xbf16>
    %cst_39 = arith.constant dense<0.000000e+00> : vector<16x128xf32>
    %77 = tpu.matmul %75, %76, %cst_39 {dimension_numbers = #tpu.dot_dimension_numbers<[1], [0], [0], [1], [0, 0, 1, 1], [], []>} : vector<16x512xbf16>, vector<512x128xbf16>, vector<16x128xf32> -> vector<16x128xf32>
    %78 = vector.broadcast %4 : vector<1x128xf32> to vector<16x128xf32>
    %79 = arith.addf %77, %78 : vector<16x128xf32>
    %c0_40 = arith.constant 0 : index
    %c0_41 = arith.constant 0 : index
    %80 = vector.load %arg7[%c0_40, %c0_41] : memref<16x128xf32, #tpu.memory_space<vmem>>, vector<1x128xf32>
    %c8 = arith.constant 8 : index
    %c0_42 = arith.constant 0 : index
    %81 = vector.load %arg7[%c8, %c0_42] : memref<16x128xf32, #tpu.memory_space<vmem>>, vector<1x128xf32>
    %82 = vector.broadcast %81 : vector<1x128xf32> to vector<16x128xf32>
    %83 = arith.subf %67, %82 : vector<16x128xf32>
    %84 = vector.broadcast %80 : vector<1x128xf32> to vector<16x128xf32>
    %85 = arith.mulf %83, %84 : vector<16x128xf32>
    %cst_43 = arith.constant 0.000000e+00 : f32
    %86 = vector.broadcast %cst_43 : f32 to vector<16x128xf32>
    %87 = arith.subf %86, %85 : vector<16x128xf32>
    %88 = math.exp %87 : vector<16x128xf32>
    %cst_44 = arith.constant 1.000000e+00 : f32
    %89 = vector.broadcast %cst_44 : f32 to vector<16x128xf32>
    %90 = arith.addf %89, %88 : vector<16x128xf32>
    %c64_i32 = arith.constant 64 : i32
    %91 = tpu.dynamic_rotate %90 by %c64_i32 dim 1 : vector<16x128xf32>, i32 -> vector<16x128xf32>
    %92 = arith.mulf %90, %91 : vector<16x128xf32>
    %c32_i32 = arith.constant 32 : i32
    %93 = tpu.dynamic_rotate %92 by %c32_i32 dim 1 : vector<16x128xf32>, i32 -> vector<16x128xf32>
    %94 = arith.mulf %92, %93 : vector<16x128xf32>
    %c16_i32 = arith.constant 16 : i32
    %95 = tpu.dynamic_rotate %94 by %c16_i32 dim 1 : vector<16x128xf32>, i32 -> vector<16x128xf32>
    %96 = arith.mulf %94, %95 : vector<16x128xf32>
    %c8_i32 = arith.constant 8 : i32
    %97 = tpu.dynamic_rotate %96 by %c8_i32 dim 1 : vector<16x128xf32>, i32 -> vector<16x128xf32>
    %98 = arith.mulf %96, %97 : vector<16x128xf32>
    %c4_i32 = arith.constant 4 : i32
    %99 = tpu.dynamic_rotate %98 by %c4_i32 dim 1 : vector<16x128xf32>, i32 -> vector<16x128xf32>
    %100 = arith.mulf %98, %99 : vector<16x128xf32>
    %c2_i32 = arith.constant 2 : i32
    %101 = tpu.dynamic_rotate %100 by %c2_i32 dim 1 : vector<16x128xf32>, i32 -> vector<16x128xf32>
    %102 = arith.mulf %100, %101 : vector<16x128xf32>
    %c1_i32 = arith.constant 1 : i32
    %103 = tpu.dynamic_rotate %102 by %c1_i32 dim 1 : vector<16x128xf32>, i32 -> vector<16x128xf32>
    %104 = arith.mulf %102, %103 : vector<16x128xf32>
    %105 = vector.extract_strided_slice %104 {offsets = [0, 0], sizes = [16, 1], strides = [1, 1]} : vector<16x128xf32> to vector<16x1xf32>
    %cst_45 = arith.constant 3.000000e+38 : f32
    %106 = vector.broadcast %cst_45 : f32 to vector<16x1xf32>
    %107 = arith.minimumf %105, %106 : vector<16x1xf32>
    %108 = tpu.reciprocal %107 {approx = true} : vector<16x1xf32> -> vector<16x1xf32>
    %c0_46 = arith.constant 0 : index
    %c0_47 = arith.constant 0 : index
    %109 = vector.load %arg9[%c0_46, %c0_47] : memref<8x128xf32, #tpu.memory_space<vmem>>, vector<1x128xf32>
    %110 = vector.broadcast %108 : vector<16x1xf32> to vector<16x128xf32>
    %111 = vector.broadcast %109 : vector<1x128xf32> to vector<16x128xf32>
    %112 = arith.mulf %110, %111 : vector<16x128xf32>
    %113 = arith.addf %79, %112 : vector<16x128xf32>
    %c1_48 = arith.constant 1 : index
    %c0_49 = arith.constant 0 : index
    %114 = vector.load %arg7[%c1_48, %c0_49] : memref<16x128xf32, #tpu.memory_space<vmem>>, vector<1x128xf32>
    %c9 = arith.constant 9 : index
    %c0_50 = arith.constant 0 : index
    %115 = vector.load %arg7[%c9, %c0_50] : memref<16x128xf32, #tpu.memory_space<vmem>>, vector<1x128xf32>
    %116 = vector.broadcast %115 : vector<1x128xf32> to vector<16x128xf32>
    %117 = arith.subf %67, %116 : vector<16x128xf32>
    %118 = vector.broadcast %114 : vector<1x128xf32> to vector<16x128xf32>
    %119 = arith.mulf %117, %118 : vector<16x128xf32>
    %cst_51 = arith.constant 0.000000e+00 : f32
    %120 = vector.broadcast %cst_51 : f32 to vector<16x128xf32>
    %121 = arith.subf %120, %119 : vector<16x128xf32>
    %122 = math.exp %121 : vector<16x128xf32>
    %cst_52 = arith.constant 1.000000e+00 : f32
    %123 = vector.broadcast %cst_52 : f32 to vector<16x128xf32>
    %124 = arith.addf %123, %122 : vector<16x128xf32>
    %c64_i32_53 = arith.constant 64 : i32
    %125 = tpu.dynamic_rotate %124 by %c64_i32_53 dim 1 : vector<16x128xf32>, i32 -> vector<16x128xf32>
    %126 = arith.mulf %124, %125 : vector<16x128xf32>
    %c32_i32_54 = arith.constant 32 : i32
    %127 = tpu.dynamic_rotate %126 by %c32_i32_54 dim 1 : vector<16x128xf32>, i32 -> vector<16x128xf32>
    %128 = arith.mulf %126, %127 : vector<16x128xf32>
    %c16_i32_55 = arith.constant 16 : i32
    %129 = tpu.dynamic_rotate %128 by %c16_i32_55 dim 1 : vector<16x128xf32>, i32 -> vector<16x128xf32>
    %130 = arith.mulf %128, %129 : vector<16x128xf32>
    %c8_i32_56 = arith.constant 8 : i32
    %131 = tpu.dynamic_rotate %130 by %c8_i32_56 dim 1 : vector<16x128xf32>, i32 -> vector<16x128xf32>
    %132 = arith.mulf %130, %131 : vector<16x128xf32>
    %c4_i32_57 = arith.constant 4 : i32
    %133 = tpu.dynamic_rotate %132 by %c4_i32_57 dim 1 : vector<16x128xf32>, i32 -> vector<16x128xf32>
    %134 = arith.mulf %132, %133 : vector<16x128xf32>
    %c2_i32_58 = arith.constant 2 : i32
    %135 = tpu.dynamic_rotate %134 by %c2_i32_58 dim 1 : vector<16x128xf32>, i32 -> vector<16x128xf32>
    %136 = arith.mulf %134, %135 : vector<16x128xf32>
    %c1_i32_59 = arith.constant 1 : i32
    %137 = tpu.dynamic_rotate %136 by %c1_i32_59 dim 1 : vector<16x128xf32>, i32 -> vector<16x128xf32>
    %138 = arith.mulf %136, %137 : vector<16x128xf32>
    %139 = vector.extract_strided_slice %138 {offsets = [0, 0], sizes = [16, 1], strides = [1, 1]} : vector<16x128xf32> to vector<16x1xf32>
    %cst_60 = arith.constant 3.000000e+38 : f32
    %140 = vector.broadcast %cst_60 : f32 to vector<16x1xf32>
    %141 = arith.minimumf %139, %140 : vector<16x1xf32>
    %142 = tpu.reciprocal %141 {approx = true} : vector<16x1xf32> -> vector<16x1xf32>
    %c1_61 = arith.constant 1 : index
    %c0_62 = arith.constant 0 : index
    %143 = vector.load %arg9[%c1_61, %c0_62] : memref<8x128xf32, #tpu.memory_space<vmem>>, vector<1x128xf32>
    %144 = vector.broadcast %142 : vector<16x1xf32> to vector<16x128xf32>
    %145 = vector.broadcast %143 : vector<1x128xf32> to vector<16x128xf32>
    %146 = arith.mulf %144, %145 : vector<16x128xf32>
    %147 = arith.addf %113, %146 : vector<16x128xf32>
    %c2_63 = arith.constant 2 : index
    %c0_64 = arith.constant 0 : index
    %148 = vector.load %arg7[%c2_63, %c0_64] : memref<16x128xf32, #tpu.memory_space<vmem>>, vector<1x128xf32>
    %c10 = arith.constant 10 : index
    %c0_65 = arith.constant 0 : index
    %149 = vector.load %arg7[%c10, %c0_65] : memref<16x128xf32, #tpu.memory_space<vmem>>, vector<1x128xf32>
    %150 = vector.broadcast %149 : vector<1x128xf32> to vector<16x128xf32>
    %151 = arith.subf %67, %150 : vector<16x128xf32>
    %152 = vector.broadcast %148 : vector<1x128xf32> to vector<16x128xf32>
    %153 = arith.mulf %151, %152 : vector<16x128xf32>
    %cst_66 = arith.constant 0.000000e+00 : f32
    %154 = vector.broadcast %cst_66 : f32 to vector<16x128xf32>
    %155 = arith.subf %154, %153 : vector<16x128xf32>
    %156 = math.exp %155 : vector<16x128xf32>
    %cst_67 = arith.constant 1.000000e+00 : f32
    %157 = vector.broadcast %cst_67 : f32 to vector<16x128xf32>
    %158 = arith.addf %157, %156 : vector<16x128xf32>
    %c64_i32_68 = arith.constant 64 : i32
    %159 = tpu.dynamic_rotate %158 by %c64_i32_68 dim 1 : vector<16x128xf32>, i32 -> vector<16x128xf32>
    %160 = arith.mulf %158, %159 : vector<16x128xf32>
    %c32_i32_69 = arith.constant 32 : i32
    %161 = tpu.dynamic_rotate %160 by %c32_i32_69 dim 1 : vector<16x128xf32>, i32 -> vector<16x128xf32>
    %162 = arith.mulf %160, %161 : vector<16x128xf32>
    %c16_i32_70 = arith.constant 16 : i32
    %163 = tpu.dynamic_rotate %162 by %c16_i32_70 dim 1 : vector<16x128xf32>, i32 -> vector<16x128xf32>
    %164 = arith.mulf %162, %163 : vector<16x128xf32>
    %c8_i32_71 = arith.constant 8 : i32
    %165 = tpu.dynamic_rotate %164 by %c8_i32_71 dim 1 : vector<16x128xf32>, i32 -> vector<16x128xf32>
    %166 = arith.mulf %164, %165 : vector<16x128xf32>
    %c4_i32_72 = arith.constant 4 : i32
    %167 = tpu.dynamic_rotate %166 by %c4_i32_72 dim 1 : vector<16x128xf32>, i32 -> vector<16x128xf32>
    %168 = arith.mulf %166, %167 : vector<16x128xf32>
    %c2_i32_73 = arith.constant 2 : i32
    %169 = tpu.dynamic_rotate %168 by %c2_i32_73 dim 1 : vector<16x128xf32>, i32 -> vector<16x128xf32>
    %170 = arith.mulf %168, %169 : vector<16x128xf32>
    %c1_i32_74 = arith.constant 1 : i32
    %171 = tpu.dynamic_rotate %170 by %c1_i32_74 dim 1 : vector<16x128xf32>, i32 -> vector<16x128xf32>
    %172 = arith.mulf %170, %171 : vector<16x128xf32>
    %173 = vector.extract_strided_slice %172 {offsets = [0, 0], sizes = [16, 1], strides = [1, 1]} : vector<16x128xf32> to vector<16x1xf32>
    %cst_75 = arith.constant 3.000000e+38 : f32
    %174 = vector.broadcast %cst_75 : f32 to vector<16x1xf32>
    %175 = arith.minimumf %173, %174 : vector<16x1xf32>
    %176 = tpu.reciprocal %175 {approx = true} : vector<16x1xf32> -> vector<16x1xf32>
    %c2_76 = arith.constant 2 : index
    %c0_77 = arith.constant 0 : index
    %177 = vector.load %arg9[%c2_76, %c0_77] : memref<8x128xf32, #tpu.memory_space<vmem>>, vector<1x128xf32>
    %178 = vector.broadcast %176 : vector<16x1xf32> to vector<16x128xf32>
    %179 = vector.broadcast %177 : vector<1x128xf32> to vector<16x128xf32>
    %180 = arith.mulf %178, %179 : vector<16x128xf32>
    %181 = arith.addf %147, %180 : vector<16x128xf32>
    %c3_78 = arith.constant 3 : index
    %c0_79 = arith.constant 0 : index
    %182 = vector.load %arg7[%c3_78, %c0_79] : memref<16x128xf32, #tpu.memory_space<vmem>>, vector<1x128xf32>
    %c11 = arith.constant 11 : index
    %c0_80 = arith.constant 0 : index
    %183 = vector.load %arg7[%c11, %c0_80] : memref<16x128xf32, #tpu.memory_space<vmem>>, vector<1x128xf32>
    %184 = vector.broadcast %183 : vector<1x128xf32> to vector<16x128xf32>
    %185 = arith.subf %67, %184 : vector<16x128xf32>
    %186 = vector.broadcast %182 : vector<1x128xf32> to vector<16x128xf32>
    %187 = arith.mulf %185, %186 : vector<16x128xf32>
    %cst_81 = arith.constant 0.000000e+00 : f32
    %188 = vector.broadcast %cst_81 : f32 to vector<16x128xf32>
    %189 = arith.subf %188, %187 : vector<16x128xf32>
    %190 = math.exp %189 : vector<16x128xf32>
    %cst_82 = arith.constant 1.000000e+00 : f32
    %191 = vector.broadcast %cst_82 : f32 to vector<16x128xf32>
    %192 = arith.addf %191, %190 : vector<16x128xf32>
    %c64_i32_83 = arith.constant 64 : i32
    %193 = tpu.dynamic_rotate %192 by %c64_i32_83 dim 1 : vector<16x128xf32>, i32 -> vector<16x128xf32>
    %194 = arith.mulf %192, %193 : vector<16x128xf32>
    %c32_i32_84 = arith.constant 32 : i32
    %195 = tpu.dynamic_rotate %194 by %c32_i32_84 dim 1 : vector<16x128xf32>, i32 -> vector<16x128xf32>
    %196 = arith.mulf %194, %195 : vector<16x128xf32>
    %c16_i32_85 = arith.constant 16 : i32
    %197 = tpu.dynamic_rotate %196 by %c16_i32_85 dim 1 : vector<16x128xf32>, i32 -> vector<16x128xf32>
    %198 = arith.mulf %196, %197 : vector<16x128xf32>
    %c8_i32_86 = arith.constant 8 : i32
    %199 = tpu.dynamic_rotate %198 by %c8_i32_86 dim 1 : vector<16x128xf32>, i32 -> vector<16x128xf32>
    %200 = arith.mulf %198, %199 : vector<16x128xf32>
    %c4_i32_87 = arith.constant 4 : i32
    %201 = tpu.dynamic_rotate %200 by %c4_i32_87 dim 1 : vector<16x128xf32>, i32 -> vector<16x128xf32>
    %202 = arith.mulf %200, %201 : vector<16x128xf32>
    %c2_i32_88 = arith.constant 2 : i32
    %203 = tpu.dynamic_rotate %202 by %c2_i32_88 dim 1 : vector<16x128xf32>, i32 -> vector<16x128xf32>
    %204 = arith.mulf %202, %203 : vector<16x128xf32>
    %c1_i32_89 = arith.constant 1 : i32
    %205 = tpu.dynamic_rotate %204 by %c1_i32_89 dim 1 : vector<16x128xf32>, i32 -> vector<16x128xf32>
    %206 = arith.mulf %204, %205 : vector<16x128xf32>
    %207 = vector.extract_strided_slice %206 {offsets = [0, 0], sizes = [16, 1], strides = [1, 1]} : vector<16x128xf32> to vector<16x1xf32>
    %cst_90 = arith.constant 3.000000e+38 : f32
    %208 = vector.broadcast %cst_90 : f32 to vector<16x1xf32>
    %209 = arith.minimumf %207, %208 : vector<16x1xf32>
    %210 = tpu.reciprocal %209 {approx = true} : vector<16x1xf32> -> vector<16x1xf32>
    %c3_91 = arith.constant 3 : index
    %c0_92 = arith.constant 0 : index
    %211 = vector.load %arg9[%c3_91, %c0_92] : memref<8x128xf32, #tpu.memory_space<vmem>>, vector<1x128xf32>
    %212 = vector.broadcast %210 : vector<16x1xf32> to vector<16x128xf32>
    %213 = vector.broadcast %211 : vector<1x128xf32> to vector<16x128xf32>
    %214 = arith.mulf %212, %213 : vector<16x128xf32>
    %215 = arith.addf %181, %214 : vector<16x128xf32>
    %c4_93 = arith.constant 4 : index
    %c0_94 = arith.constant 0 : index
    %216 = vector.load %arg7[%c4_93, %c0_94] : memref<16x128xf32, #tpu.memory_space<vmem>>, vector<1x128xf32>
    %c12 = arith.constant 12 : index
    %c0_95 = arith.constant 0 : index
    %217 = vector.load %arg7[%c12, %c0_95] : memref<16x128xf32, #tpu.memory_space<vmem>>, vector<1x128xf32>
    %218 = vector.broadcast %217 : vector<1x128xf32> to vector<16x128xf32>
    %219 = arith.subf %67, %218 : vector<16x128xf32>
    %220 = vector.broadcast %216 : vector<1x128xf32> to vector<16x128xf32>
    %221 = arith.mulf %219, %220 : vector<16x128xf32>
    %cst_96 = arith.constant 0.000000e+00 : f32
    %222 = vector.broadcast %cst_96 : f32 to vector<16x128xf32>
    %223 = arith.subf %222, %221 : vector<16x128xf32>
    %224 = math.exp %223 : vector<16x128xf32>
    %cst_97 = arith.constant 1.000000e+00 : f32
    %225 = vector.broadcast %cst_97 : f32 to vector<16x128xf32>
    %226 = arith.addf %225, %224 : vector<16x128xf32>
    %c64_i32_98 = arith.constant 64 : i32
    %227 = tpu.dynamic_rotate %226 by %c64_i32_98 dim 1 : vector<16x128xf32>, i32 -> vector<16x128xf32>
    %228 = arith.mulf %226, %227 : vector<16x128xf32>
    %c32_i32_99 = arith.constant 32 : i32
    %229 = tpu.dynamic_rotate %228 by %c32_i32_99 dim 1 : vector<16x128xf32>, i32 -> vector<16x128xf32>
    %230 = arith.mulf %228, %229 : vector<16x128xf32>
    %c16_i32_100 = arith.constant 16 : i32
    %231 = tpu.dynamic_rotate %230 by %c16_i32_100 dim 1 : vector<16x128xf32>, i32 -> vector<16x128xf32>
    %232 = arith.mulf %230, %231 : vector<16x128xf32>
    %c8_i32_101 = arith.constant 8 : i32
    %233 = tpu.dynamic_rotate %232 by %c8_i32_101 dim 1 : vector<16x128xf32>, i32 -> vector<16x128xf32>
    %234 = arith.mulf %232, %233 : vector<16x128xf32>
    %c4_i32_102 = arith.constant 4 : i32
    %235 = tpu.dynamic_rotate %234 by %c4_i32_102 dim 1 : vector<16x128xf32>, i32 -> vector<16x128xf32>
    %236 = arith.mulf %234, %235 : vector<16x128xf32>
    %c2_i32_103 = arith.constant 2 : i32
    %237 = tpu.dynamic_rotate %236 by %c2_i32_103 dim 1 : vector<16x128xf32>, i32 -> vector<16x128xf32>
    %238 = arith.mulf %236, %237 : vector<16x128xf32>
    %c1_i32_104 = arith.constant 1 : i32
    %239 = tpu.dynamic_rotate %238 by %c1_i32_104 dim 1 : vector<16x128xf32>, i32 -> vector<16x128xf32>
    %240 = arith.mulf %238, %239 : vector<16x128xf32>
    %241 = vector.extract_strided_slice %240 {offsets = [0, 0], sizes = [16, 1], strides = [1, 1]} : vector<16x128xf32> to vector<16x1xf32>
    %cst_105 = arith.constant 3.000000e+38 : f32
    %242 = vector.broadcast %cst_105 : f32 to vector<16x1xf32>
    %243 = arith.minimumf %241, %242 : vector<16x1xf32>
    %244 = tpu.reciprocal %243 {approx = true} : vector<16x1xf32> -> vector<16x1xf32>
    %c4_106 = arith.constant 4 : index
    %c0_107 = arith.constant 0 : index
    %245 = vector.load %arg9[%c4_106, %c0_107] : memref<8x128xf32, #tpu.memory_space<vmem>>, vector<1x128xf32>
    %246 = vector.broadcast %244 : vector<16x1xf32> to vector<16x128xf32>
    %247 = vector.broadcast %245 : vector<1x128xf32> to vector<16x128xf32>
    %248 = arith.mulf %246, %247 : vector<16x128xf32>
    %249 = arith.addf %215, %248 : vector<16x128xf32>
    %c5 = arith.constant 5 : index
    %c0_108 = arith.constant 0 : index
    %250 = vector.load %arg7[%c5, %c0_108] : memref<16x128xf32, #tpu.memory_space<vmem>>, vector<1x128xf32>
    %c13 = arith.constant 13 : index
    %c0_109 = arith.constant 0 : index
    %251 = vector.load %arg7[%c13, %c0_109] : memref<16x128xf32, #tpu.memory_space<vmem>>, vector<1x128xf32>
    %252 = vector.broadcast %251 : vector<1x128xf32> to vector<16x128xf32>
    %253 = arith.subf %67, %252 : vector<16x128xf32>
    %254 = vector.broadcast %250 : vector<1x128xf32> to vector<16x128xf32>
    %255 = arith.mulf %253, %254 : vector<16x128xf32>
    %cst_110 = arith.constant 0.000000e+00 : f32
    %256 = vector.broadcast %cst_110 : f32 to vector<16x128xf32>
    %257 = arith.subf %256, %255 : vector<16x128xf32>
    %258 = math.exp %257 : vector<16x128xf32>
    %cst_111 = arith.constant 1.000000e+00 : f32
    %259 = vector.broadcast %cst_111 : f32 to vector<16x128xf32>
    %260 = arith.addf %259, %258 : vector<16x128xf32>
    %c64_i32_112 = arith.constant 64 : i32
    %261 = tpu.dynamic_rotate %260 by %c64_i32_112 dim 1 : vector<16x128xf32>, i32 -> vector<16x128xf32>
    %262 = arith.mulf %260, %261 : vector<16x128xf32>
    %c32_i32_113 = arith.constant 32 : i32
    %263 = tpu.dynamic_rotate %262 by %c32_i32_113 dim 1 : vector<16x128xf32>, i32 -> vector<16x128xf32>
    %264 = arith.mulf %262, %263 : vector<16x128xf32>
    %c16_i32_114 = arith.constant 16 : i32
    %265 = tpu.dynamic_rotate %264 by %c16_i32_114 dim 1 : vector<16x128xf32>, i32 -> vector<16x128xf32>
    %266 = arith.mulf %264, %265 : vector<16x128xf32>
    %c8_i32_115 = arith.constant 8 : i32
    %267 = tpu.dynamic_rotate %266 by %c8_i32_115 dim 1 : vector<16x128xf32>, i32 -> vector<16x128xf32>
    %268 = arith.mulf %266, %267 : vector<16x128xf32>
    %c4_i32_116 = arith.constant 4 : i32
    %269 = tpu.dynamic_rotate %268 by %c4_i32_116 dim 1 : vector<16x128xf32>, i32 -> vector<16x128xf32>
    %270 = arith.mulf %268, %269 : vector<16x128xf32>
    %c2_i32_117 = arith.constant 2 : i32
    %271 = tpu.dynamic_rotate %270 by %c2_i32_117 dim 1 : vector<16x128xf32>, i32 -> vector<16x128xf32>
    %272 = arith.mulf %270, %271 : vector<16x128xf32>
    %c1_i32_118 = arith.constant 1 : i32
    %273 = tpu.dynamic_rotate %272 by %c1_i32_118 dim 1 : vector<16x128xf32>, i32 -> vector<16x128xf32>
    %274 = arith.mulf %272, %273 : vector<16x128xf32>
    %275 = vector.extract_strided_slice %274 {offsets = [0, 0], sizes = [16, 1], strides = [1, 1]} : vector<16x128xf32> to vector<16x1xf32>
    %cst_119 = arith.constant 3.000000e+38 : f32
    %276 = vector.broadcast %cst_119 : f32 to vector<16x1xf32>
    %277 = arith.minimumf %275, %276 : vector<16x1xf32>
    %278 = tpu.reciprocal %277 {approx = true} : vector<16x1xf32> -> vector<16x1xf32>
    %c5_120 = arith.constant 5 : index
    %c0_121 = arith.constant 0 : index
    %279 = vector.load %arg9[%c5_120, %c0_121] : memref<8x128xf32, #tpu.memory_space<vmem>>, vector<1x128xf32>
    %280 = vector.broadcast %278 : vector<16x1xf32> to vector<16x128xf32>
    %281 = vector.broadcast %279 : vector<1x128xf32> to vector<16x128xf32>
    %282 = arith.mulf %280, %281 : vector<16x128xf32>
    %283 = arith.addf %249, %282 : vector<16x128xf32>
    %c6 = arith.constant 6 : index
    %c0_122 = arith.constant 0 : index
    %284 = vector.load %arg7[%c6, %c0_122] : memref<16x128xf32, #tpu.memory_space<vmem>>, vector<1x128xf32>
    %c14 = arith.constant 14 : index
    %c0_123 = arith.constant 0 : index
    %285 = vector.load %arg7[%c14, %c0_123] : memref<16x128xf32, #tpu.memory_space<vmem>>, vector<1x128xf32>
    %286 = vector.broadcast %285 : vector<1x128xf32> to vector<16x128xf32>
    %287 = arith.subf %67, %286 : vector<16x128xf32>
    %288 = vector.broadcast %284 : vector<1x128xf32> to vector<16x128xf32>
    %289 = arith.mulf %287, %288 : vector<16x128xf32>
    %cst_124 = arith.constant 0.000000e+00 : f32
    %290 = vector.broadcast %cst_124 : f32 to vector<16x128xf32>
    %291 = arith.subf %290, %289 : vector<16x128xf32>
    %292 = math.exp %291 : vector<16x128xf32>
    %cst_125 = arith.constant 1.000000e+00 : f32
    %293 = vector.broadcast %cst_125 : f32 to vector<16x128xf32>
    %294 = arith.addf %293, %292 : vector<16x128xf32>
    %c64_i32_126 = arith.constant 64 : i32
    %295 = tpu.dynamic_rotate %294 by %c64_i32_126 dim 1 : vector<16x128xf32>, i32 -> vector<16x128xf32>
    %296 = arith.mulf %294, %295 : vector<16x128xf32>
    %c32_i32_127 = arith.constant 32 : i32
    %297 = tpu.dynamic_rotate %296 by %c32_i32_127 dim 1 : vector<16x128xf32>, i32 -> vector<16x128xf32>
    %298 = arith.mulf %296, %297 : vector<16x128xf32>
    %c16_i32_128 = arith.constant 16 : i32
    %299 = tpu.dynamic_rotate %298 by %c16_i32_128 dim 1 : vector<16x128xf32>, i32 -> vector<16x128xf32>
    %300 = arith.mulf %298, %299 : vector<16x128xf32>
    %c8_i32_129 = arith.constant 8 : i32
    %301 = tpu.dynamic_rotate %300 by %c8_i32_129 dim 1 : vector<16x128xf32>, i32 -> vector<16x128xf32>
    %302 = arith.mulf %300, %301 : vector<16x128xf32>
    %c4_i32_130 = arith.constant 4 : i32
    %303 = tpu.dynamic_rotate %302 by %c4_i32_130 dim 1 : vector<16x128xf32>, i32 -> vector<16x128xf32>
    %304 = arith.mulf %302, %303 : vector<16x128xf32>
    %c2_i32_131 = arith.constant 2 : i32
    %305 = tpu.dynamic_rotate %304 by %c2_i32_131 dim 1 : vector<16x128xf32>, i32 -> vector<16x128xf32>
    %306 = arith.mulf %304, %305 : vector<16x128xf32>
    %c1_i32_132 = arith.constant 1 : i32
    %307 = tpu.dynamic_rotate %306 by %c1_i32_132 dim 1 : vector<16x128xf32>, i32 -> vector<16x128xf32>
    %308 = arith.mulf %306, %307 : vector<16x128xf32>
    %309 = vector.extract_strided_slice %308 {offsets = [0, 0], sizes = [16, 1], strides = [1, 1]} : vector<16x128xf32> to vector<16x1xf32>
    %cst_133 = arith.constant 3.000000e+38 : f32
    %310 = vector.broadcast %cst_133 : f32 to vector<16x1xf32>
    %311 = arith.minimumf %309, %310 : vector<16x1xf32>
    %312 = tpu.reciprocal %311 {approx = true} : vector<16x1xf32> -> vector<16x1xf32>
    %c6_134 = arith.constant 6 : index
    %c0_135 = arith.constant 0 : index
    %313 = vector.load %arg9[%c6_134, %c0_135] : memref<8x128xf32, #tpu.memory_space<vmem>>, vector<1x128xf32>
    %314 = vector.broadcast %312 : vector<16x1xf32> to vector<16x128xf32>
    %315 = vector.broadcast %313 : vector<1x128xf32> to vector<16x128xf32>
    %316 = arith.mulf %314, %315 : vector<16x128xf32>
    %317 = arith.addf %283, %316 : vector<16x128xf32>
    %c0_136 = arith.constant 0 : index
    %c0_137 = arith.constant 0 : index
    %318 = vector.load %arg10[%c0_136, %c0_137] : memref<16x128xf32, #tpu.memory_space<vmem>>, vector<16x128xf32>
    tpu.vector_store %arg10[%c0_136, %c0_137], %317 {strides = array<i32>} : memref<16x128xf32, #tpu.memory_space<vmem>>, vector<16x128xf32>,
    return
  }
  func.func @transform_0(%arg0: i32) -> (i32, i32) {
    %c0_i32 = arith.constant 0 : i32
    %c0_i32_0 = arith.constant 0 : i32
    return %arg0, %c0_i32 : i32, i32
  }
  func.func @transform_1(%arg0: i32) -> (i32, i32) {
    %c0_i32 = arith.constant 0 : i32
    %c0_i32_0 = arith.constant 0 : i32
    %c0_i32_1 = arith.constant 0 : i32
    return %c0_i32, %c0_i32_0 : i32, i32
  }
  func.func @transform_2(%arg0: i32) -> (i32, i32) {
    %c0_i32 = arith.constant 0 : i32
    %c0_i32_0 = arith.constant 0 : i32
    %c0_i32_1 = arith.constant 0 : i32
    return %c0_i32, %c0_i32_0 : i32, i32
  }
  func.func @transform_3(%arg0: i32) -> (i32, i32) {
    %c0_i32 = arith.constant 0 : i32
    %c0_i32_0 = arith.constant 0 : i32
    %c0_i32_1 = arith.constant 0 : i32
    return %c0_i32, %c0_i32_0 : i32, i32
  }
  func.func @transform_4(%arg0: i32) -> (i32, i32) {
    %c0_i32 = arith.constant 0 : i32
    %c0_i32_0 = arith.constant 0 : i32
    %c0_i32_1 = arith.constant 0 : i32
    return %c0_i32, %c0_i32_0 : i32, i32
  }
  func.func @transform_5(%arg0: i32) -> (i32, i32) {
    %c0_i32 = arith.constant 0 : i32
    %c0_i32_0 = arith.constant 0 : i32
    %c0_i32_1 = arith.constant 0 : i32
    return %c0_i32, %c0_i32_0 : i32, i32
  }
  func.func @transform_6(%arg0: i32) -> (i32, i32) {
    %c0_i32 = arith.constant 0 : i32
    %c0_i32_0 = arith.constant 0 : i32
    %c0_i32_1 = arith.constant 0 : i32
    return %c0_i32, %c0_i32_0 : i32, i32
  }
  func.func @transform_7(%arg0: i32) -> (i32, i32) {
    %c0_i32 = arith.constant 0 : i32
    %c0_i32_0 = arith.constant 0 : i32
    %c0_i32_1 = arith.constant 0 : i32
    return %c0_i32, %c0_i32_0 : i32, i32
  }
  func.func @transform_8(%arg0: i32) -> (i32, i32) {
    %c0_i32 = arith.constant 0 : i32
    %c0_i32_0 = arith.constant 0 : i32
    %c0_i32_1 = arith.constant 0 : i32
    return %c0_i32, %c0_i32_0 : i32, i32
  }
  func.func @transform_9(%arg0: i32) -> (i32, i32) {
    %c0_i32 = arith.constant 0 : i32
    %c0_i32_0 = arith.constant 0 : i32
    return %arg0, %c0_i32 : i32, i32
  }
}

</mosaic_0001>

<bundles_post_ra>
// kernel: tpu_custom_call.1
= control target key start
LH: loop header
LB: loop body
LE: loop exit
PB: predicated region body
PF: predicated region fallthrough
CT: control target
= control target key end

     0   :  { %14 = vsyncpa [#allocation3], 0  ;;  %s2785_s0 = inlined_call_operand.hbm [shape: bf16[16,1024], index: 0, kind: input, shape index: {}]   ;;  %s2786_s1 = inlined_call_operand.hbm [shape: f32[4,128], index: 1, kind: input, shape index: {}]   ;;  %s2787_s2 = inlined_call_operand.hbm [shape: bf16[128,128], index: 2, kind: input, shape index: {}]   ;;  %s2788_s3 = inlined_call_operand.hbm [shape: bf16[128,128], index: 3, kind: input, shape index: {}]   ;;  %s2789_s4 = inlined_call_operand.hbm [shape: bf16[128,512], index: 4, kind: input, shape index: {}]   ;;  %s2790_s5 = inlined_call_operand.hbm [shape: bf16[512,128], index: 5, kind: input, shape index: {}]   ;;  %s2791_s6 = inlined_call_operand.hbm [shape: f32[16,128], index: 6, kind: input, shape index: {}]   ;;  %s2792_s7 = inlined_call_operand.hbm [shape: f32[8,512], index: 7, kind: input, shape index: {}]   ;;  %s2793_s8 = inlined_call_operand.hbm [shape: f32[8,128], index: 8, kind: input, shape index: {}]   ;;  %s2794_s9 = inlined_call_operand.hbm [shape: f32[16,128], index: 9, kind: output, shape index: {}]  }
   0x1   :  { %15 = vsyncpa [#allocation6], 0 }
   0x2   :  { %16 = vsyncpa [#allocation9], 0 }
   0x3   :  { %17 = vsyncpa [#allocation12], 0 }
   0x4   :  { %18 = vsyncpa [#allocation15], 0  ;;  %s38_s11 = sshll.u32 %s2786_s1, 4  ;;  %s39_s11 = int_to_ptr.hbm [resolvable:$true] %s38_s11 }
   0x5   :  { %19 = vsyncpa [#allocation4], 0  ;;  %s2373_s12 = smov [#allocation5]   ;;  %s61_s16 = sshll.u32 %s2788_s3, 4  ;;  %s62_s16 = int_to_ptr.hbm [resolvable:$true] %s61_s16 }
   0x6   :  { %s40_s13 = sshll.u32 %s2373_s12, 4  ;;  %s2374_s17 = smov [#allocation8]   ;;  %s41_s13 = int_to_ptr.vmem [resolvable:$true] %s40_s13 }
   0x7   :  { %43 = dma.hbm_to_vmem [thread:$0]  %s39_s11, 64, %s41_s13, [#allocation6]  }
   0x8   :  { %s63_s18 = sshll.u32 %s2374_s17, 4  ;;  %s87_s21 = sshll.u32 %s2790_s5, 4  ;;  %s64_s18 = int_to_ptr.vmem [resolvable:$true] %s63_s18  ;;  %s88_s21 = int_to_ptr.hbm [resolvable:$true] %s87_s21 }
   0x9   :  { %s2375_s1 = smov 64   ;;  %s2376_s22 = smov 4  }
   0xa   :  { %69 = dma.hbm_to_vmem [thread:$0]  %s62_s16, 1024, %s64_s18, [#allocation9], %s2375_s1, %s2375_s1, %s2376_s22  }
   0xb   :  { %s114_s25 = sshll.u32 %s2792_s7, 4  ;;  %s2377_s3 = smov [#allocation11]   ;;  %s115_s25 = int_to_ptr.hbm [resolvable:$true] %s114_s25 }
   0xc   :  { %s89_s26 = sshll.u32 %s2377_s3, 4  ;;  %s2378_s5 = smov [#allocation14]   ;;  %s90_s26 = int_to_ptr.vmem [resolvable:$true] %s89_s26 }
   0xd   :  { %95 = dma.hbm_to_vmem [thread:$0]  %s88_s21, 4096, %s90_s26, [#allocation12], %s2375_s1, %s2375_s1, %s2376_s22  }
   0xe   :  { %s116_s27 = sshll.u32 %s2378_s5, 4  ;;  %s24_s30 = sshll.u32 %s2785_s0, 4  ;;  %s117_s27 = int_to_ptr.vmem [resolvable:$true] %s116_s27  ;;  %s25_s30 = int_to_ptr.hbm [resolvable:$true] %s24_s30 }
   0xf   :  { %119 = dma.hbm_to_vmem [thread:$0]  %s115_s25, 512, %s117_s27, [#allocation15]  }
  0x10   :  { %s2379_s10 = smov [#allocation2]   ;;  %s48_s13 = sshll.u32 %s2787_s2, 4  ;;  %s49_s13 = int_to_ptr.hbm [resolvable:$true] %s48_s13 }
  0x11   :  { %s26_s11 = sshll.u32 %s2379_s10, 4  ;;  %s2380_s14 = smov 512   ;;  %s27_s11 = int_to_ptr.vmem [resolvable:$true] %s26_s11 }
  0x12   :  { %s2381_s15 = smov 32   ;;  %s2382_s16 = smov [#allocation7]  }
  0x13   :  { %32 = dma.hbm_to_vmem [thread:$0]  %s25_s30, 1024, %s27_s11, [#allocation3], %s2380_s14, %s2380_s14, %s2381_s15  }
  0x14   :  { %s50_s17 = sshll.u32 %s2382_s16, 4  ;;  %s74_s0 = sshll.u32 %s2789_s4, 4  ;;  %s51_s17 = int_to_ptr.vmem [resolvable:$true] %s50_s17  ;;  %s75_s0 = int_to_ptr.hbm [resolvable:$true] %s74_s0 }
  0x15   :  { %56 = dma.hbm_to_vmem [thread:$0]  %s49_s13, 1024, %s51_s17, [#allocation6], %s2375_s1, %s2375_s1, %s2376_s22  }
  0x16   :  { %s2383_s20 = smov [#allocation10]   ;;  %s100_s24 = sshll.u32 %s2791_s6, 4  ;;  %s101_s24 = int_to_ptr.hbm [resolvable:$true] %s100_s24 }
  0x17   :  { %s76_s21 = sshll.u32 %s2383_s20, 4  ;;  %s2384_s25 = smov 256   ;;  %s77_s21 = int_to_ptr.vmem [resolvable:$true] %s76_s21 }
  0x18   :  { %s2385_s3 = smov 16   ;;  %s2386_s26 = smov [#allocation13]  }
  0x19   :  { %82 = dma.hbm_to_vmem [thread:$0]  %s75_s0, 4096, %s77_s21, [#allocation9], %s2384_s25, %s2384_s25, %s2385_s3  }
  0x1a   :  { %s102_s4 = sshll.u32 %s2386_s26, 4  ;;  %s2387_s5 = smov 128   ;;  %s103_s4 = int_to_ptr.vmem [resolvable:$true] %s102_s4 }
  0x1b   :  { %s2388_s27 = smov 8   ;;  %s125_s30 = sshll.u32 %s2793_s8, 4  ;;  %s126_s30 = int_to_ptr.hbm [resolvable:$true] %s125_s30 }
  0x1c   :  { %108 = dma.hbm_to_vmem [thread:$0]  %s101_s24, 256, %s103_s4, [#allocation12], %s2387_s5, %s2387_s5, %s2388_s27  }
  0x1d   :  { %s2389_s6 = smov [#allocation16]  }
  0x1e   :  { %s127_s10 = sshll.u32 %s2389_s6, 4  ;;  %s128_s10 = int_to_ptr.vmem [resolvable:$true] %s127_s10 }
  0x1f   :  { %130 = dma.hbm_to_vmem [thread:$0]  %s126_s30, 128, %s128_s10, [#allocation15]  }
  0x20   :  { %2361 = dma.done.wait [#allocation3], 1024  }
  0x21   :  { %2362 = vsyncadd [#allocation3], 4294966272 }
  0x22   :  { %2363 = dma.done.wait [#allocation6], 1088  }
  0x23   :  { %2364 = vsyncadd [#allocation6], 4294966208 }
  0x24   :  { %2365 = dma.done.wait [#allocation9], 5120  }
  0x25   :  { %2366 = vsyncadd [#allocation9], 4294962176 }
  0x26   :  { %2367 = dma.done.wait [#allocation12], 4352  }
  0x27   :  { %2368 = vsyncadd [#allocation12], 4294962944 }
  0x28   :  { %2369 = dma.done.wait [#allocation15], 640  }
  0x29   :  { %2370 = vsyncadd [#allocation15], 4294966656  ;;  %v191_v0 = vld [vmem:[#allocation2 + $0x8] sm:$0xff]  ;;  %v173_v1 = vld [vmem:[#allocation2] sm:$0xff]  ;;  %s2390_s8 = smov 2   ;;  %s1589_s13 = sshll.u32 %s2794_s9, 4  ;;  %s1590_s13 = int_to_ptr.hbm [resolvable:$true] %s1589_s13 }
  0x2a   :  { %v211_v2 = vld [vmem:[#allocation2 + $0x10] sm:$0xff]  ;;  %v193_v3 = vunpack.c.l.bf16 %v191_v0  ;;  %v194_v4 = vunpack.c.h.bf16 %v191_v0  ;;  %v175_v5 = vunpack.c.l.bf16 %v173_v1  ;;  %v176_v6 = vunpack.c.h.bf16 %v173_v1  ;;  %v192_v9 = vld [vmem:[#allocation2 + $0x28] sm:$0xff]  ;;  %v174_v10 = vld [vmem:[#allocation2 + $0x20] sm:$0xff] }
  0x2b   :  { %v213_v7 = vunpack.c.l.bf16 %v211_v2  ;;  %v214_v8 = vunpack.c.h.bf16 %v211_v2  ;;  %v1935_v11 = vld [vmem:[#allocation7 + $0x38] sm:$0xff]  ;;  %v212_v14 = vld [vmem:[#allocation2 + $0x30] sm:$0xff]  ;;  %v195_v17 = vunpack.c.l.bf16 %v192_v9  ;;  %v196_v18 = vunpack.c.h.bf16 %v192_v9  ;;  %v1932_v35 = vld [vmem:[#allocation7 + $0x20] sm:$0xff] }
  0x2c   :  { %v197_v12 = vadd.f32 %v194_v4, %v193_v3  ;;  %v179_v13 = vadd.f32 %v176_v6, %v175_v5  ;;  %v1934_v15 = vld [vmem:[#allocation7 + $0x30] sm:$0xff]  ;;  %318 = vmatpush.bf16.msra.mxu0 %v1935_v11  ;;  %v177_v19 = vunpack.c.l.bf16 %v174_v10  ;;  %v178_v20 = vunpack.c.h.bf16 %v174_v10  ;;  %v1933_v34 = vld [vmem:[#allocation7 + $0x28] sm:$0xff]  ;;  %v1931_v36 = vld [vmem:[#allocation7 + $0x18] sm:$0xff] }
  0x2d   :  { %v217_v16 = vadd.f32 %v214_v8, %v213_v7  ;;  %v215_v21 = vunpack.c.l.bf16 %v212_v14  ;;  %v216_v22 = vunpack.c.h.bf16 %v212_v14  ;;  %v232_v23 = vld [vmem:[#allocation2 + $0x38] sm:$0xff]  ;;  %v200_v25 = vadd.f32 %v196_v18, %v195_v17  ;;  %v1929_v38 = vld [vmem:[#allocation7 + $0x8] sm:$0xff]  ;;  %v1928_v39 = vld [vmem:[#allocation7] sm:$0xff] }
  0x2e   :  { %198 = vadd.xlane.f32.xlu1 %v197_v12  ;;  %180 = vadd.xlane.f32.xlu0 %v179_v13  ;;  %v231_v24 = vld [vmem:[#allocation2 + $0x18] sm:$0xff]  ;;  %v182_v26 = vadd.f32 %v178_v20, %v177_v19  ;;  %v235_v28 = vunpack.c.l.bf16 %v232_v23  ;;  %v236_v29 = vunpack.c.h.bf16 %v232_v23  ;;  %v1941_v45 = vld [vmem:[#allocation8 + $0x28] sm:$0xff]  ;;  %v1940_v46 = vld [vmem:[#allocation8 + $0x20] sm:$0xff] }
  0x2f   :  { %218 = vadd.xlane.f32.xlu2 %v217_v16  ;;  %v220_v27 = vadd.f32 %v216_v22, %v215_v21  ;;  %v233_v30 = vunpack.c.l.bf16 %v231_v24  ;;  %v234_v31 = vunpack.c.h.bf16 %v231_v24  ;;  %v1930_v37 = vld [vmem:[#allocation7 + $0x10] sm:$0xff]  ;;  %v1943_v40 = vld [vmem:[#allocation8 + $0x38] sm:$0xff]  ;;  %v1937_v20 = vld [vmem:[#allocation8 + $0x8] sm:$0xff] }
  0x30   :  { %319 = vmatpush.bf16.msra.mxu0 %v1934_v15  ;;  %v240_v32 = vadd.f32 %v236_v29, %v235_v28  ;;  %399 = vmatpush.bf16.msra.mxu1 %v1943_v40  ;;  %v1942_v41 = vld [vmem:[#allocation8 + $0x30] sm:$0xff]  ;;  %v2032_v47 = vld [vmem:[#allocation5 + $0x1] ss:$0 sm:$0xff]  ;;  %v2033_v49 = vld [vmem:[#allocation5] ss:$0 sm:$0xff] }
  0x31   :  { %v237_v33 = vadd.f32 %v234_v31, %v233_v30  ;;  %v2034_v59 = vld [vmem:[#allocation5 + $0x2] ss:$0 sm:$0xff]  ;;  %v2035_v3 = vld [vmem:[#allocation5 + $0x3] ss:$0 sm:$0xff]  ;;  %v167_v12 = vld [vmem:[#allocation14] ss:$0 sm:$0xff] }
  0x32   :  { %v1939_v18 = vld [vmem:[#allocation8 + $0x18] sm:$0xff]  ;;  %v1938_v19 = vld [vmem:[#allocation8 + $0x10] sm:$0xff]  ;;  %v1936_v21 = vld [vmem:[#allocation8] sm:$0xff] }
  0x33   :  { %v168_v23 = vld [vmem:[#allocation14 + $0x1] ss:$0 sm:$0xff]  ;;  %v1786_v30 = vld [vmem:[#allocation10 + $0xe0] sm:$0xf]  ;;  %v1796_v40 = vld [vmem:[#allocation10 + $0xf8] sm:$0xf0] }
  0x34   :  { %320 = vmatpush.bf16.msra.mxu0 %v1933_v34  ;;  %400 = vmatpush.bf16.msra.mxu1 %v1942_v41  ;;  %v1974_v31 = vld [vmem:[#allocation10 + $0xec] sm:$0xf0]  ;;  %v1788_v34 = vld [vmem:[#allocation10 + $0xf0] sm:$0xf0] }
  0x36   :  { %201 = vadd.xlane.f32.xlu1 %v200_v25  ;;  %183 = vadd.xlane.f32.xlu0 %v182_v26 }
  0x37   :  { %221 = vadd.xlane.f32.xlu2 %v220_v27 }
  0x38   :  { %321 = vmatpush.bf16.msra.mxu0 %v1932_v35  ;;  %401 = vmatpush.bf16.msra.mxu1 %v1941_v45  ;;  %v1794_v35 = vld [vmem:[#allocation10 + $0xe8] sm:$0xf] }
  0x3c   :  { %322 = vmatpush.bf16.msra.mxu0 %v1931_v36  ;;  %402 = vmatpush.bf16.msra.mxu1 %v1940_v46  ;;  %v1975_v36 = vld [vmem:[#allocation10 + $0xf4] sm:$0xf0]  ;;  %v1772_v46 = vld [vmem:[#allocation10 + $0xd0] sm:$0xf0] }
  0x3e   :  { %241 = vadd.xlane.f32.xlu1 %v240_v32  ;;  %238 = vadd.xlane.f32.xlu0 %v237_v33  ;;  %v1972_v32 = vld [vmem:[#allocation10 + $0xe4] sm:$0xf]  ;;  %v1787_v33 = vor.u32 %v1974_v31, %v1786_v30  ;;  %v1954_v30 = vld [vmem:[#allocation10 + $0x4c] sm:$0xf0] }
  0x3f   :  { %v1952_v31 = vld [vmem:[#allocation10 + $0x44] sm:$0xf] }
  0x40   :  { %323 = vmatpush.bf16.msra.mxu0 %v1930_v37  ;;  %403 = vmatpush.bf16.msra.mxu1 %v1939_v18  ;;  %v1791_v37 = vor.u32 %v1972_v32, %v1788_v34  ;;  %v1956_v18 = vld [vmem:[#allocation10 + $0x64] sm:$0xf]  ;;  %v1714_v34 = vld [vmem:[#allocation10 + $0x48] sm:$0xf] }
  0x41   :  { %655 = vmatpush.bf16.msra.mxu2 %v1787_v33  ;;  %v1708_v33 = vld [vmem:[#allocation10 + $0x50] sm:$0xf0] }
  0x42   :  { %669 = vmatpush.bf16.msra.mxu3 %v1791_v37 }
  0x44   :  { %324 = vmatpush.bf16.msra.mxu0 %v1929_v38  ;;  %404 = vmatpush.bf16.msra.mxu1 %v1938_v19  ;;  %v1795_v38 = vor.u32 %v1975_v36, %v1794_v35  ;;  %v1955_v35 = vld [vmem:[#allocation10 + $0x54] sm:$0xf0]  ;;  %v1711_v36 = vor.u32 %v1952_v31, %v1708_v33  ;;  %v2046_v33 = vld [vmem:[#allocation13 + $0xb] ss:$0 sm:$0xff] }
  0x45   :  { %v1715_v37 = vor.u32 %v1955_v35, %v1714_v34 }
  0x48   :  { %325 = vmatpush.bf16.msra.mxu0 %v1928_v39  ;;  %405 = vmatpush.bf16.msra.mxu1 %v1937_v20  ;;  %v1973_v39 = vld [vmem:[#allocation10 + $0xec] sm:$0xf]  ;;  %v1724_v20 = vld [vmem:[#allocation10 + $0x70] sm:$0xf0] }
  0x49   :  { %v1799_v41 = vor.u32 %v1973_v39, %v1796_v40  ;;  %v1716_v39 = vld [vmem:[#allocation10 + $0x58] sm:$0xf0] }
  0x4c   :  { %406 = vmatpush.bf16.msra.mxu1 %v1936_v21  ;;  %683 = vmatpush.bf16.msrb.mxu0 %v1795_v38  ;;  %v1730_v21 = vld [vmem:[#allocation10 + $0x68] sm:$0xf]  ;;  %v1953_v38 = vld [vmem:[#allocation10 + $0x4c] sm:$0xf] }
  0x50   :  { %697 = vmatpush.bf16.msrb.mxu1 %v1799_v41  ;;  %v1719_v41 = vor.u32 %v1953_v38, %v1716_v39  ;;  %v2508_v39 = vld [vmem:[#allocation13 + $0x4] ss:$0 sm:$0xff] }
  0xa1   :  { %v199_v42 = vpop.xlane.xlu1 %198  ;;  %v181_v43 = vpop.xlane.xlu0 %180 }
  0xa2   :  { %v219_v44 = vpop.xlane.xlu2 %218  ;;  %v203_v48 = vmul.f32 0.00390625, %v199_v42  ;;  %v185_v50 = vmul.f32 0.00390625, %v181_v43  ;;  %v1770_v42 = vld [vmem:[#allocation10 + $0xc0] sm:$0xf]  ;;  %v1970_v43 = vld [vmem:[#allocation10 + $0xcc] sm:$0xf0] }
  0xa3   :  { %v223_v57 = vmul.f32 0.00390625, %v219_v44  ;;  %v1968_v44 = vld [vmem:[#allocation10 + $0xc4] sm:$0xf]  ;;  %v1771_v45 = vor.u32 %v1970_v43, %v1770_v42  ;;  %v1690_v43 = vld [vmem:[#allocation10 + $0x20] sm:$0xf] }
  0xa4   :  { %v207_v56 = vmul.f32 %v2032_v47, %v203_v48  ;;  %v189_v58 = vmul.f32 %v2033_v49, %v185_v50  ;;  %v1971_v48 = vld [vmem:[#allocation10 + $0xd4] sm:$0xf0] }
  0xa5   :  { %v227_v0 = vmul.f32 %v2034_v59, %v223_v57  ;;  %656 = vmatpush.bf16.msra.mxu2 %v1771_v45  ;;  %v1948_v45 = vld [vmem:[#allocation10 + $0x24] sm:$0xf] }
  0xa6   :  { %v209_v63 = vadd.f32 %v207_v56, %v189_v58  ;;  %v1964_v56 = vld [vmem:[#allocation10 + $0xa4] sm:$0xf]  ;;  %v1756_v58 = vld [vmem:[#allocation10 + $0xb0] sm:$0xf0] }
  0xa8   :  { %v229_v8 = vadd.f32 %v227_v0, %v209_v63  ;;  %v1965_v63 = vld [vmem:[#allocation10 + $0xac] sm:$0xf]  ;;  %v1764_v0 = vld [vmem:[#allocation10 + $0xb8] sm:$0xf0] }
  0xa9   :  { %v202_v51 = vpop.xlane.xlu1 %201  ;;  %v184_v52 = vpop.xlane.xlu0 %183 }
  0xaa   :  { %v204_v53 = vmul.f32 0.00390625, %v202_v51  ;;  %v186_v54 = vmul.f32 0.00390625, %v184_v52  ;;  %v222_v55 = vpop.xlane.xlu2 %221  ;;  %v1969_v51 = vld [vmem:[#allocation10 + $0xcc] sm:$0xf]  ;;  %v1780_v52 = vld [vmem:[#allocation10 + $0xd8] sm:$0xf0] }
  0xab   :  { %v224_v62 = vmul.f32 0.00390625, %v222_v55  ;;  %v1966_v55 = vld [vmem:[#allocation10 + $0xac] sm:$0xf0] }
  0xac   :  { %v208_v60 = vmul.f32 %v2032_v47, %v204_v53  ;;  %v190_v61 = vmul.f32 %v2033_v49, %v186_v54  ;;  %v1778_v47 = vld [vmem:[#allocation10 + $0xc8] sm:$0xf]  ;;  %v1775_v49 = vor.u32 %v1968_v44, %v1772_v46  ;;  %v1783_v53 = vor.u32 %v1969_v51, %v1780_v52  ;;  %v1754_v54 = vld [vmem:[#allocation10 + $0xa0] sm:$0xf]  ;;  %v1950_v44 = vld [vmem:[#allocation10 + $0x2c] sm:$0xf0] }
  0xad   :  { %v228_v2 = vmul.f32 %v2034_v59, %v224_v62  ;;  %v1779_v50 = vor.u32 %v1971_v48, %v1778_v47  ;;  %v1755_v57 = vor.u32 %v1966_v55, %v1754_v54  ;;  %v1762_v59 = vld [vmem:[#allocation10 + $0xa8] sm:$0xf]  ;;  %v1691_v46 = vor.u32 %v1950_v44, %v1690_v43  ;;  %v1692_v47 = vld [vmem:[#allocation10 + $0x30] sm:$0xf0]  ;;  %v1700_v54 = vld [vmem:[#allocation10 + $0x38] sm:$0xf0] }
  0xae   :  { %v210_v1 = vadd.f32 %v208_v60, %v190_v61  ;;  %670 = vmatpush.bf16.msra.mxu3 %v1775_v49  ;;  %698 = vmatpush.bf16.msrb.mxu1 %v1783_v53  ;;  %v1967_v60 = vld [vmem:[#allocation10 + $0xb4] sm:$0xf0]  ;;  %v1759_v61 = vor.u32 %v1964_v56, %v1756_v58  ;;  %v1698_v48 = vld [vmem:[#allocation10 + $0x28] sm:$0xf]  ;;  %v1695_v51 = vor.u32 %v1948_v45, %v1692_v47  ;;  %v1949_v53 = vld [vmem:[#allocation10 + $0x2c] sm:$0xf] }
  0xaf   :  { %684 = vmatpush.bf16.msrb.mxu0 %v1779_v50  ;;  %v1763_v62 = vor.u32 %v1967_v60, %v1762_v59  ;;  %657 = vmatpush.bf16.msra.mxu2 %v1755_v57  ;;  %v1951_v49 = vld [vmem:[#allocation10 + $0x34] sm:$0xf0]  ;;  %v1703_v55 = vor.u32 %v1949_v53, %v1700_v54  ;;  %v1674_v56 = vld [vmem:[#allocation10] sm:$0xf]  ;;  %v1946_v57 = vld [vmem:[#allocation10 + $0xc] sm:$0xf0] }
  0xb0   :  { %v230_v9 = vadd.f32 %v228_v2, %v210_v1  ;;  %v1767_v1 = vor.u32 %v1965_v63, %v1764_v0  ;;  %v1738_v2 = vld [vmem:[#allocation10 + $0x80] sm:$0xf]  ;;  %v1699_v52 = vor.u32 %v1951_v49, %v1698_v48  ;;  %v1944_v58 = vld [vmem:[#allocation10 + $0x4] sm:$0xf]  ;;  %v1675_v59 = vor.u32 %v1946_v57, %v1674_v56  ;;  %v1676_v60 = vld [vmem:[#allocation10 + $0x10] sm:$0xf0] }
  0xb1   :  { %v242_v4 = vpop.xlane.xlu1 %241  ;;  %v239_v5 = vpop.xlane.xlu0 %238  ;;  %v1679_v63 = vor.u32 %v1944_v58, %v1676_v60 }
  0xb2   :  { %v244_v6 = vmul.f32 0.00390625, %v242_v4  ;;  %v243_v7 = vmul.f32 0.00390625, %v239_v5  ;;  %671 = vmatpush.bf16.msra.mxu3 %v1759_v61  ;;  %v1960_v4 = vld [vmem:[#allocation10 + $0x84] sm:$0xf]  ;;  %699 = vmatpush.bf16.msrb.mxu1 %v1767_v1  ;;  %v1682_v61 = vld [vmem:[#allocation10 + $0x8] sm:$0xf] }
  0xb3   :  { %685 = vmatpush.bf16.msrb.mxu0 %v1763_v62  ;;  %v1947_v62 = vld [vmem:[#allocation10 + $0x14] sm:$0xf0]  ;;  %v1945_v1 = vld [vmem:[#allocation10 + $0xc] sm:$0xf] }
  0xb4   :  { %v248_v10 = vmul.f32 %v2035_v3, %v244_v6  ;;  %v247_v11 = vmul.f32 %v2035_v3, %v243_v7  ;;  %v1962_v3 = vld [vmem:[#allocation10 + $0x8c] sm:$0xf0]  ;;  %v1740_v6 = vld [vmem:[#allocation10 + $0x90] sm:$0xf0]  ;;  %v1746_v7 = vld [vmem:[#allocation10 + $0x88] sm:$0xf]  ;;  %v1683_v0 = vor.u32 %v1947_v62, %v1682_v61 }
  0xb5   :  { %v1739_v5 = vor.u32 %v1962_v3, %v1738_v2  ;;  %v1684_v2 = vld [vmem:[#allocation10 + $0x18] sm:$0xf0] }
  0xb6   :  { %v250_v13 = vadd.f32 %v248_v10, %v230_v9  ;;  %v249_v14 = vadd.f32 %v247_v11, %v229_v8  ;;  %v1963_v8 = vld [vmem:[#allocation10 + $0x94] sm:$0xf0]  ;;  %v1743_v9 = vor.u32 %v1960_v4, %v1740_v6  ;;  %v1961_v11 = vld [vmem:[#allocation10 + $0x8c] sm:$0xf]  ;;  %v1687_v4 = vor.u32 %v1945_v1, %v1684_v2 }
  0xb7   :  { %v1747_v10 = vor.u32 %v1963_v8, %v1746_v7  ;;  %658 = vmatpush.bf16.msra.mxu2 %v1739_v5 }
  0xb8   :  { %v2485_v15 = vadd.f32 %v249_v14, %v167_v12  ;;  %v2487_v16 = vadd.f32 %v250_v13, %v167_v12  ;;  %v1748_v12 = vld [vmem:[#allocation10 + $0x98] sm:$0xf0]  ;;  %672 = vmatpush.bf16.msra.mxu3 %v1743_v9  ;;  %v1722_v14 = vld [vmem:[#allocation10 + $0x60] sm:$0xf] }
  0xb9   :  { %v1751_v13 = vor.u32 %v1961_v11, %v1748_v12  ;;  %686 = vmatpush.bf16.msrb.mxu0 %v1747_v10 }
  0xba   :  { %v253_v17 = vpack.c.bf16 %v2487_v16, %v2485_v15 }
  0xbb   :  { %700 = vmatpush.bf16.msrb.mxu1 %v1751_v13 }
  0xbc   :  { %326 = vmatmul.bf16.vlgmr.msra.gmra.mxu0 %v253_v17  ;;  %v1958_v17 = vld [vmem:[#allocation10 + $0x6c] sm:$0xf0] }
  0xbd   :  { %v1723_v19 = vor.u32 %v1958_v17, %v1722_v14 }
  0xbf   :  { %659 = vmatpush.bf16.msra.mxu2 %v1723_v19 }
 0x139   :  { %v327_v22 = vpop.f32.mrf.mxu0 }
 0x13a   :  { %v328_v24 = vadd.f32 %v327_v22, %v168_v23  ;;  %v1959_v22 = vld [vmem:[#allocation10 + $0x74] sm:$0xf0] }
 0x13c   :  { %v332_v27 = vmax.f32 %v328_v24, 0.0  ;;  %v1731_v24 = vor.u32 %v1959_v22, %v1730_v21 }
 0x13e   :  { %687 = vmatpush.bf16.msrb.mxu0 %v1731_v24  ;;  %v2495_v24 = vld [vmem:[#allocation13 + $0x8] ss:$0 sm:$0xff] }
 0x141   :  { %v329_v25 = vpop.f32.mrf.mxu0 }
 0x142   :  { %v330_v26 = vadd.f32 %v329_v25, %v168_v23  ;;  %v1727_v23 = vor.u32 %v1956_v18, %v1724_v20  ;;  %v1957_v25 = vld [vmem:[#allocation10 + $0x6c] sm:$0xf]  ;;  %688 = vmatpush.bf16.msrb.mxu0 %v1715_v37  ;;  %v2491_v20 = vld [vmem:[#allocation13 + $0xa] ss:$0 sm:$0xff]  ;;  %v2506_v37 = vld [vmem:[#allocation13 + $0x5] ss:$0 sm:$0xff] }
 0x144   :  { %v333_v28 = vmax.f32 %v330_v26, 0.0  ;;  %v1732_v26 = vld [vmem:[#allocation10 + $0x78] sm:$0xf0]  ;;  %673 = vmatpush.bf16.msra.mxu3 %v1727_v23  ;;  %v2493_v23 = vld [vmem:[#allocation13 + $0x9] ss:$0 sm:$0xff] }
 0x146   :  { %v334_v29 = vpack.c.bf16 %v333_v28, %v332_v27  ;;  %v169_v27 = vld [vmem:[#allocation14 + $0x2] ss:$0 sm:$0xff]  ;;  %v1735_v28 = vor.u32 %v1957_v25, %v1732_v26  ;;  %689 = vmatpush.bf16.msrb.mxu0 %v1699_v52 }
 0x148   :  { %407 = vmatmul.bf16.vlgmr.msra.gmra.mxu1 %v334_v29  ;;  %v1706_v29 = vld [vmem:[#allocation10 + $0x40] sm:$0xf]  ;;  %674 = vmatpush.bf16.msra.mxu3 %v1711_v36 }
 0x149   :  { %701 = vmatpush.bf16.msrb.mxu1 %v1735_v28  ;;  %v1707_v32 = vor.u32 %v1954_v30, %v1706_v29  ;;  %v2039_v28 = vld [vmem:[#allocation13 + $0x1] ss:$0 sm:$0xff]  ;;  %v2499_v29 = vld [vmem:[#allocation13 + $0xd] ss:$0 sm:$0xff]  ;;  %v2041_v36 = vld [vmem:[#allocation13] ss:$0 sm:$0xff] }
 0x14a   :  { %690 = vmatpush.bf16.msrb.mxu0 %v1683_v0 }
 0x14b   :  { %660 = vmatpush.bf16.msra.mxu2 %v1707_v32  ;;  %v2501_v32 = vld [vmem:[#allocation13 + $0xc] ss:$0 sm:$0xff] }
 0x14c   :  { %675 = vmatpush.bf16.msra.mxu3 %v1695_v51 }
 0x14d   :  { %702 = vmatpush.bf16.msrb.mxu1 %v1719_v41 }
 0x14f   :  { %661 = vmatpush.bf16.msra.mxu2 %v1691_v46 }
 0x150   :  { %676 = vmatpush.bf16.msra.mxu3 %v1679_v63 }
 0x151   :  { %703 = vmatpush.bf16.msrb.mxu1 %v1703_v55 }
 0x153   :  { %662 = vmatpush.bf16.msra.mxu2 %v1675_v59 }
 0x155   :  { %704 = vmatpush.bf16.msrb.mxu1 %v1687_v4 }
 0x1c5   :  { %v408_v40 = vpop.f32.mrf.mxu1 }
 0x1c6   :  { %v409_v42 = vadd.f32 %v408_v40, %v169_v27  ;;  %v2047_v40 = vld [vmem:[#allocation13 + $0x3] ss:$0 sm:$0xff] }
 0x1c8   :  { %v1670_v50 = vmul.f32 -1.442695, %v409_v42 }
 0x1ca   :  { %2057 = vpow2.f32 %v1670_v50 }
 0x1cd   :  { %v410_v3 = vpop.f32.mrf.mxu1 }
 0x1ce   :  { %v411_v5 = vadd.f32 %v410_v3, %v169_v27  ;;  %v2497_v27 = vld [vmem:[#allocation13 + $0x2] ss:$0 sm:$0xff] }
 0x1d0   :  { %v2058_v6 = vpop.eup %2057  ;;  %v1671_v7 = vmul.f32 -1.442695, %v411_v5 }
 0x1d1   :  { %v419_v8 = vadd.f32 1.0, %v2058_v6 }
 0x1d2   :  { %2059 = vpow2.f32 %v1671_v7 }
 0x1d3   :  { %2061 = vrcp.f32 %v419_v8  ;;  %v432_v14 = vand.u32 2147483648, %v419_v8  ;;  %v430_v18 = vand.u32 2147483647, %v419_v8  ;;  %vm426_vm1 = vweird.f32 %v419_v8 }
 0x1d5   :  { %v433_v22 = vor.u32 1.1754944e-38, %v432_v14  ;;  %vm431_vm3 = vcmp.eq.f32.partialorder %v430_v18, 8.507059e+37 }
 0x1d8   :  { %v2060_v9 = vpop.eup %2059 }
 0x1d9   :  { %v2062_v10 = vpop.eup %2061  ;;  %v420_v11 = vadd.f32 1.0, %v2060_v9 }
 0x1da   :  { %v422_v12 = vmul.f32 %v2062_v10, %v419_v8  ;;  %vm427_vm0 = vweird.f32 %v2062_v10 }
 0x1db   :  { %2063 = vrcp.f32 %v420_v11  ;;  %vm428_vm2 = vmor %vm426_vm1, %vm427_vm0  ;;  %v445_v31 = vand.u32 2147483647, %v420_v11  ;;  %vm441_vm4 = vweird.f32 %v420_v11  ;;  %v447_v38 = vand.u32 2147483648, %v420_v11 }
 0x1dc   :  { %v423_v13 = vsub.f32 1.0, %v422_v12 }
 0x1dd   :  { %vm2516_vm6 = vcmp.eq.f32.partialorder %v445_v31, 8.507059e+37  ;;  %v448_v52 = vor.u32 1.1754944e-38, %v447_v38 }
 0x1de   :  { %v424_v17 = vmul.f32 %v2062_v10, %v423_v13  ;;  %v2048_v13 = vld [vmem:[#allocation13 + $0xe] ss:$0 sm:$0xff] }
 0x1e0   :  { %v425_v19 = vadd.f32 %v2062_v10, %v424_v17 }
 0x1e1   :  { %v2064_v21 = vpop.eup %2063 }
 0x1e2   :  { %v429_v25 = vsel %vm428_vm2, %v2062_v10, %v425_v19  ;;  %v437_v26 = vmul.f32 %v2064_v21, %v420_v11  ;;  %vm442_vm5 = vweird.f32 %v2064_v21 }
 0x1e3   :  { %v434_v30 = vsel %vm431_vm3, %v433_v22, %v429_v25  ;;  %vm443_vm7 = vmor %vm441_vm4, %vm442_vm5 }
 0x1e4   :  { %v2504_v34 = vmul.f32 %v434_v30, %v2485_v15  ;;  %v438_v35 = vsub.f32 1.0, %v437_v26 }
 0x1e6   :  { %v439_v41 = vmul.f32 %v2064_v21, %v438_v35  ;;  %v1194_v42 = vsub.f32 %v2504_v34, %v2491_v20  ;;  %v1116_v43 = vsub.f32 %v2504_v34, %v2493_v23  ;;  %v1038_v15 = vsub.f32 %v2504_v34, %v2495_v24 }
 0x1e7   :  { %v1428_v45 = vsub.f32 %v2504_v34, %v2499_v29  ;;  %v1350_v46 = vsub.f32 %v2504_v34, %v2501_v32  ;;  %v1272_v47 = vsub.f32 %v2504_v34, %v2046_v33 }
 0x1e8   :  { %v440_v48 = vadd.f32 %v2064_v21, %v439_v41  ;;  %v1197_v49 = vmul.f32 %v2497_v27, %v1194_v42  ;;  %v1119_v50 = vmul.f32 %v2039_v28, %v1116_v43  ;;  %v1041_v51 = vmul.f32 %v2041_v36, %v1038_v15 }
 0x1e9   :  { %v1431_v53 = vmul.f32 %v2506_v37, %v1428_v45  ;;  %v1353_v54 = vmul.f32 %v2508_v39, %v1350_v46  ;;  %v1275_v55 = vmul.f32 %v2047_v40, %v1272_v47 }
 0x1ea   :  { %v444_v56 = vsel %vm443_vm7, %v2064_v21, %v440_v48  ;;  %v1199_v57 = vsub.f32 0.0, %v1197_v49  ;;  %v1121_v58 = vsub.f32 0.0, %v1119_v50  ;;  %v1043_v59 = vsub.f32 0.0, %v1041_v51 }
 0x1eb   :  { %v449_v60 = vsel %vm2516_vm6, %v448_v52, %v444_v56  ;;  %v1433_v61 = vsub.f32 0.0, %v1431_v53  ;;  %v1355_v2 = vsub.f32 0.0, %v1353_v54  ;;  %v1277_v3 = vsub.f32 0.0, %v1275_v55 }
 0x1ec   :  { %v2533_v62 = vmul.f32 %v449_v60, %v2487_v16  ;;  %v1201_v63 = vmul.f32 1.442695, %v1199_v57  ;;  %v1123_v0 = vmul.f32 1.442695, %v1121_v58  ;;  %v1045_v1 = vmul.f32 1.442695, %v1043_v59 }
 0x1ed   :  { %v1435_v16 = vmul.f32 1.442695, %v1433_v61  ;;  %v1357_v9 = vmul.f32 1.442695, %v1355_v2  ;;  %v1279_v11 = vmul.f32 1.442695, %v1277_v3 }
 0x1ee   :  { %v453_v4 = vpack.c.bf16 %v2533_v62, %v2504_v34  ;;  %2065 = vpow2.f32 %v1201_v63  ;;  %v1273_v5 = vsub.f32 %v2533_v62, %v2046_v33  ;;  %v1039_v6 = vsub.f32 %v2533_v62, %v2495_v24 }
 0x1ef   :  { %2067 = vpow2.f32 %v1123_v0  ;;  %v1117_v7 = vsub.f32 %v2533_v62, %v2493_v23  ;;  %v1507_v18 = vsub.f32 %v2533_v62, %v2048_v13  ;;  %v1195_v23 = vsub.f32 %v2533_v62, %v2491_v20 }
 0x1f0   :  { %663 = vmatmul.bf16.vlgmr.msra.gmra.mxu2 %v453_v4  ;;  %677 = vmatmul.bf16.vlgmr.msra.gmra.mxu3 %v453_v4  ;;  %2069 = vpow2.f32 %v1045_v1  ;;  %v1276_v8 = vmul.f32 %v2047_v40, %v1273_v5  ;;  %v1042_v10 = vmul.f32 %v2041_v36, %v1039_v6  ;;  %v1351_v30 = vsub.f32 %v2533_v62, %v2501_v32  ;;  %v1999_v6 = vld [vmem:[#allocation11 + $0xb8] sm:$0xff] }
 0x1f1   :  { %691 = vmatmul.bf16.vlgmr.msrb.gmra.mxu0 %v453_v4  ;;  %705 = vmatmul.bf16.vlgmr.msrb.gmra.mxu1 %v453_v4  ;;  %v1120_v12 = vmul.f32 %v2039_v28, %v1117_v7  ;;  %2071 = vpow2.f32 %v1435_v16  ;;  %v2049_v28 = vld [vmem:[#allocation13 + $0x6] ss:$0 sm:$0xff]  ;;  %v1198_v36 = vmul.f32 %v2497_v27, %v1195_v23  ;;  %v1429_v45 = vsub.f32 %v2533_v62, %v2499_v29  ;;  %v2007_v7 = vld [vmem:[#allocation11 + $0xf8] sm:$0xff]  ;;  %v1998_v16 = vld [vmem:[#allocation11 + $0xb0] sm:$0xff] }
 0x1f2   :  { %v1278_v17 = vsub.f32 0.0, %v1276_v8  ;;  %2073 = vpow2.f32 %v1357_v9  ;;  %v1044_v22 = vsub.f32 0.0, %v1042_v10  ;;  %v1510_v35 = vmul.f32 %v2049_v28, %v1507_v18  ;;  %1007 = vmatpush.bf16.msra.mxu0 %v1999_v6  ;;  %1021 = vmatpush.bf16.msra.mxu1 %v2007_v7  ;;  %v2006_v8 = vld [vmem:[#allocation11 + $0xf0] sm:$0xff]  ;;  %v1983_v9 = vld [vmem:[#allocation11 + $0x38] sm:$0xff]  ;;  %v2004_v18 = vld [vmem:[#allocation11 + $0xe0] sm:$0xff] }
 0x1f3   :  { %2075 = vpow2.f32 %v1279_v11  ;;  %v1122_v26 = vsub.f32 0.0, %v1120_v12  ;;  %v1354_v32 = vmul.f32 %v2508_v39, %v1351_v30  ;;  %v1200_v44 = vsub.f32 0.0, %v1198_v36  ;;  %v1991_v10 = vld [vmem:[#allocation11 + $0x78] sm:$0xff]  ;;  %979 = vmatpush.bf16.msrb.mxu2 %v1983_v9  ;;  %v1997_v11 = vld [vmem:[#allocation11 + $0xa8] sm:$0xff] }
 0x1f4   :  { %v2066_v14 = vpop.eup %2065  ;;  %v1281_v33 = vmul.f32 1.442695, %v1278_v17  ;;  %v1047_v20 = vmul.f32 1.442695, %v1044_v22  ;;  %v1512_v43 = vsub.f32 0.0, %v1510_v35  ;;  %v1506_v27 = vsub.f32 %v2504_v34, %v2048_v13  ;;  %993 = vmatpush.bf16.msrb.mxu3 %v1991_v10  ;;  %v2005_v12 = vld [vmem:[#allocation11 + $0xe8] sm:$0xff] }
 0x1f5   :  { %v2068_v19 = vpop.eup %2067  ;;  %v2543_v21 = vadd.f32 1.0, %v2066_v14  ;;  %v1125_v40 = vmul.f32 1.442695, %v1122_v26  ;;  %v1356_v47 = vsub.f32 0.0, %v1354_v32  ;;  %v1203_v49 = vmul.f32 1.442695, %v1200_v44 }
 0x1f6   :  { %v2070_v24 = vpop.eup %2069  ;;  %v2547_v25 = vadd.f32 1.0, %v2068_v19  ;;  %2077 = vpow2.f32 %v1281_v33  ;;  %v1515_v48 = vmul.f32 1.442695, %v1512_v43  ;;  %v1432_v29 = vmul.f32 %v2506_v37, %v1429_v45  ;;  %1008 = vmatpush.bf16.msra.mxu0 %v1998_v16  ;;  %1022 = vmatpush.bf16.msra.mxu1 %v2006_v8  ;;  %v1982_v13 = vld [vmem:[#allocation11 + $0x30] sm:$0xff]  ;;  %v1996_v17 = vld [vmem:[#allocation11 + $0xa0] sm:$0xff]  ;;  %v1981_v19 = vld [vmem:[#allocation11 + $0x28] sm:$0xff] }
 0x1f7   :  { %1207 = vrot.lane.b32.xlu1 %v2543_v21, %s2375_s1  ;;  %v2553_v31 = vadd.f32 1.0, %v2070_v24  ;;  %v2072_v38 = vpop.eup %2071  ;;  %2079 = vpow2.f32 %v1047_v20  ;;  %v1359_v51 = vmul.f32 1.442695, %v1356_v47  ;;  %v1509_v52 = vmul.f32 %v2049_v28, %v1506_v27  ;;  %v1990_v14 = vld [vmem:[#allocation11 + $0x70] sm:$0xff]  ;;  %980 = vmatpush.bf16.msrb.mxu2 %v1982_v13  ;;  %v1989_v22 = vld [vmem:[#allocation11 + $0x68] sm:$0xff]  ;;  %v1995_v23 = vld [vmem:[#allocation11 + $0x98] sm:$0xff] }
 0x1f8   :  { %1129 = vrot.lane.b32.xlu0 %v2547_v25, %s2375_s1  ;;  %v2074_v41 = vpop.eup %2073  ;;  %v2561_v15 = vadd.f32 1.0, %v2072_v38  ;;  %2081 = vpow2.f32 %v1125_v40  ;;  %v1434_v55 = vsub.f32 0.0, %v1432_v29  ;;  %994 = vmatpush.bf16.msrb.mxu3 %v1990_v14  ;;  %v2003_v24 = vld [vmem:[#allocation11 + $0xd8] sm:$0xff]  ;;  %v1980_v26 = vld [vmem:[#allocation11 + $0x20] sm:$0xff]  ;;  %v1994_v33 = vld [vmem:[#allocation11 + $0x90] sm:$0xff] }
 0x1f9   :  { %1051 = vrot.lane.b32.xlu2 %v2553_v31, %s2375_s1  ;;  %v2076_v42 = vpop.eup %2075  ;;  %v2565_v46 = vadd.f32 1.0, %v2074_v41  ;;  %2083 = vpow2.f32 %v1515_v48  ;;  %v1511_v57 = vsub.f32 0.0, %v1509_v52  ;;  %v1988_v28 = vld [vmem:[#allocation11 + $0x60] sm:$0xff]  ;;  %v2002_v35 = vld [vmem:[#allocation11 + $0xd0] sm:$0xff]  ;;  %v1979_v36 = vld [vmem:[#allocation11 + $0x18] sm:$0xff] }
 0x1fa   :  { %v2570_v39 = vadd.f32 1.0, %v2076_v42  ;;  %2085 = vpow2.f32 %v1203_v49  ;;  %v1437_v37 = vmul.f32 1.442695, %v1434_v55  ;;  %1009 = vmatpush.bf16.msra.mxu0 %v1997_v11  ;;  %1023 = vmatpush.bf16.msra.mxu1 %v2005_v12  ;;  %v1987_v38 = vld [vmem:[#allocation11 + $0x58] sm:$0xff]  ;;  %v1993_v32 = vld [vmem:[#allocation11 + $0x88] sm:$0xff]  ;;  %v1978_v42 = vld [vmem:[#allocation11 + $0x10] sm:$0xff] }
 0x1fb   :  { %2087 = vpow2.f32 %v1359_v51  ;;  %v1513_v60 = vmul.f32 1.442695, %v1511_v57  ;;  %981 = vmatpush.bf16.msrb.mxu2 %v1981_v19  ;;  %v2001_v41 = vld [vmem:[#allocation11 + $0xc8] sm:$0xff]  ;;  %v1992_v44 = vld [vmem:[#allocation11 + $0x80] sm:$0xff] }
 0x1fc   :  { %v2078_v50 = vpop.eup %2077  ;;  %2089 = vpow2.f32 %v1437_v37  ;;  %995 = vmatpush.bf16.msrb.mxu3 %v1989_v22  ;;  %v2000_v45 = vld [vmem:[#allocation11 + $0xc0] sm:$0xff]  ;;  %v1977_v47 = vld [vmem:[#allocation11 + $0x8] sm:$0xff] }
 0x1fd   :  { %v2080_v53 = vpop.eup %2079  ;;  %v2577_v54 = vadd.f32 1.0, %v2078_v50  ;;  %2091 = vpow2.f32 %v1513_v60  ;;  %v1985_v27 = vld [vmem:[#allocation11 + $0x48] sm:$0xff]  ;;  %v1976_v49 = vld [vmem:[#allocation11] sm:$0xff] }
 0x1fe   :  { %v2082_v34 = vpop.eup %2081  ;;  %v2579_v56 = vadd.f32 1.0, %v2080_v53  ;;  %1010 = vmatpush.bf16.msra.mxu0 %v1996_v17  ;;  %1024 = vmatpush.bf16.msra.mxu1 %v2004_v18  ;;  %v171_v57 = vld [vmem:[#allocation14 + $0x3] ss:$8 sm:$0xf] }
 0x1ff   :  { %1441 = vrot.lane.b32.xlu1 %v2561_v15, %s2375_s1  ;;  %v2583_v58 = vadd.f32 1.0, %v2082_v34  ;;  %v2084_v59 = vpop.eup %2083  ;;  %982 = vmatpush.bf16.msrb.mxu2 %v1980_v26  ;;  %v489_v37 = vperm.slane %v171_v57, 2  ;;  %v488_v9 = vperm.slane %v171_v57, 1 }
 0x200   :  { %1363 = vrot.lane.b32.xlu0 %v2565_v46, %s2375_s1  ;;  %v2086_v61 = vpop.eup %2085  ;;  %v2589_v63 = vadd.f32 1.0, %v2084_v59  ;;  %996 = vmatpush.bf16.msrb.mxu3 %v1988_v28  ;;  %v490_v59 = vperm.slane %v171_v57, 3 }
 0x201   :  { %1285 = vrot.lane.b32.xlu2 %v2570_v39, %s2375_s1  ;;  %v2088_v62 = vpop.eup %2087  ;;  %v2591_v0 = vadd.f32 1.0, %v2086_v61 }
 0x202   :  { %v2595_v1 = vadd.f32 1.0, %v2088_v62  ;;  %v2090_v2 = vpop.eup %2089  ;;  %1011 = vmatpush.bf16.msra.mxu0 %v1995_v23  ;;  %1025 = vmatpush.bf16.msra.mxu1 %v2003_v24 }
 0x203   :  { %v2092_v3 = vpop.eup %2091  ;;  %v2601_v4 = vadd.f32 1.0, %v2090_v2  ;;  %983 = vmatpush.bf16.msrb.mxu2 %v1979_v36 }
 0x204   :  { %v2603_v5 = vadd.f32 1.0, %v2092_v3  ;;  %997 = vmatpush.bf16.msrb.mxu3 %v1987_v38 }
 0x206   :  { %1012 = vmatpush.bf16.msra.mxu0 %v1994_v33  ;;  %1026 = vmatpush.bf16.msra.mxu1 %v2002_v35 }
 0x207   :  { %1287 = vrot.lane.b32.xlu1 %v2577_v54, %s2375_s1  ;;  %984 = vmatpush.bf16.msrb.mxu2 %v1978_v42 }
 0x208   :  { %1053 = vrot.lane.b32.xlu0 %v2579_v56, %s2375_s1 }
 0x209   :  { %1131 = vrot.lane.b32.xlu2 %v2583_v58, %s2375_s1 }
 0x20a   :  { %1013 = vmatpush.bf16.msra.mxu0 %v1993_v32  ;;  %1027 = vmatpush.bf16.msra.mxu1 %v2001_v41 }
 0x20b   :  { %985 = vmatpush.bf16.msrb.mxu2 %v1977_v47 }
 0x20e   :  { %1014 = vmatpush.bf16.msra.mxu0 %v1992_v44  ;;  %1028 = vmatpush.bf16.msra.mxu1 %v2000_v45 }
 0x20f   :  { %1521 = vrot.lane.b32.xlu1 %v2589_v63, %s2375_s1  ;;  %986 = vmatpush.bf16.msrb.mxu2 %v1976_v49 }
 0x210   :  { %1209 = vrot.lane.b32.xlu0 %v2591_v0, %s2375_s1 }
 0x211   :  { %1365 = vrot.lane.b32.xlu2 %v2595_v1, %s2375_s1 }
 0x218   :  { %1443 = vrot.lane.b32.xlu0 %v2601_v4, %s2375_s1 }
 0x219   :  { %1519 = vrot.lane.b32.xlu2 %v2603_v5, %s2375_s1  ;;  %s2391_s1 = smov 1  }
 0x253   :  { %v1052_v30 = vpop.permute.xlu2 %1051 }
 0x254   :  { %v2610_v20 = vmul.f32 %v1052_v30, %v2553_v31  ;;  %v1986_v31 = vld [vmem:[#allocation11 + $0x50] sm:$0xff] }
 0x255   :  { %998 = vmatpush.bf16.msrb.mxu3 %v1986_v31 }
 0x256   :  { %1057 = vrot.lane.b32.xlu1 %v2610_v20, %s2381_s15 }
 0x259   :  { %999 = vmatpush.bf16.msrb.mxu3 %v1985_v27 }
 0x25b   :  { %v1286_v40 = vpop.permute.xlu2 %1285 }
 0x25c   :  { %v2615_v43 = vmul.f32 %v1286_v40, %v2570_v39  ;;  %v1984_v39 = vld [vmem:[#allocation11 + $0x40] sm:$0xff] }
 0x25d   :  { %1000 = vmatpush.bf16.msrb.mxu3 %v1984_v39 }
 0x25e   :  { %1291 = vrot.lane.b32.xlu1 %v2615_v43, %s2381_s15 }
 0x263   :  { %v1132_v48 = vpop.permute.xlu2 %1131 }
 0x264   :  { %v2620_v29 = vmul.f32 %v1132_v48, %v2583_v58 }
 0x266   :  { %1137 = vrot.lane.b32.xlu1 %v2620_v29, %s2381_s15 }
 0x269   :  { %v1208_v50 = vpop.permute.xlu1 %1207 }
 0x26a   :  { %v2625_v51 = vmul.f32 %v1208_v50, %v2543_v21  ;;  %v1130_v52 = vpop.permute.xlu0 %1129 }
 0x26b   :  { %v2628_v53 = vmul.f32 %v1130_v52, %v2547_v25  ;;  %v1366_v34 = vpop.permute.xlu2 %1365 }
 0x26c   :  { %v2631_v55 = vmul.f32 %v1366_v34, %v2595_v1  ;;  %1213 = vrot.lane.b32.xlu0 %v2625_v51, %s2381_s15 }
 0x26d   :  { %1135 = vrot.lane.b32.xlu2 %v2628_v53, %s2381_s15 }
 0x26e   :  { %1371 = vrot.lane.b32.xlu1 %v2631_v55, %s2381_s15  ;;  %v692_v21 = vpop.f32.mrf.mxu0  ;;  %v706_v58 = vpop.f32.mrf.mxu1 }
 0x26f   :  { %v693_v7 = vadd.f32 %v692_v21, %v489_v37  ;;  %v707_v16 = vadd.f32 %v706_v58, %v490_v59 }
 0x271   :  { %v1442_v25 = vpop.permute.xlu1 %1441  ;;  %v714_v12 = vmax.f32 %v707_v16, 0.0 }
 0x272   :  { %v2640_v60 = vmul.f32 %v1442_v25, %v2561_v15  ;;  %v1364_v61 = vpop.permute.xlu0 %1363  ;;  %v487_v15 = vperm.slane %v171_v57, 0 }
 0x273   :  { %v2643_v62 = vmul.f32 %v1364_v61, %v2565_v46  ;;  %v1520_v1 = vpop.permute.xlu2 %1519  ;;  %v664_v2 = vpop.f32.mrf.mxu2 }
 0x274   :  { %v2646_v3 = vmul.f32 %v1520_v1, %v2603_v5  ;;  %v678_v6 = vpop.f32.mrf.mxu3  ;;  %1447 = vrot.lane.b32.xlu0 %v2640_v60, %s2381_s15  ;;  %v713_v5 = vmax.f32 %v693_v7, 0.0  ;;  %v665_v18 = vadd.f32 %v664_v2, %v487_v15 }
 0x275   :  { %1369 = vrot.lane.b32.xlu2 %v2643_v62, %s2381_s15  ;;  %v679_v23 = vadd.f32 %v678_v6, %v488_v9 }
 0x276   :  { %1525 = vrot.lane.b32.xlu1 %v2646_v3, %s2381_s15  ;;  %v694_v46 = vpop.f32.mrf.mxu0  ;;  %v708_v8 = vpop.f32.mrf.mxu1  ;;  %v711_v38 = vmax.f32 %v665_v18, 0.0 }
 0x277   :  { %v695_v10 = vadd.f32 %v694_v46, %v489_v37  ;;  %v709_v11 = vadd.f32 %v708_v8, %v490_v59 }
 0x279   :  { %v717_v13 = vmax.f32 %v695_v10, 0.0  ;;  %v718_v14 = vmax.f32 %v709_v11, 0.0  ;;  %v1288_v17 = vpop.permute.xlu1 %1287 }
 0x27a   :  { %v2655_v19 = vmul.f32 %v1288_v17, %v2577_v54  ;;  %v1054_v22 = vpop.permute.xlu0 %1053  ;;  %v712_v54 = vmax.f32 %v679_v23, 0.0 }
 0x27b   :  { %v721_v24 = vpack.c.bf16 %v717_v13, %v713_v5  ;;  %v722_v26 = vpack.c.bf16 %v718_v14, %v714_v12  ;;  %v1056_v28 = vmul.f32 %v1054_v22, %v2579_v56  ;;  %v666_v30 = vpop.f32.mrf.mxu2 }
 0x27c   :  { %v667_v33 = vadd.f32 %v666_v30, %v487_v15  ;;  %v680_v35 = vpop.f32.mrf.mxu3  ;;  %1293 = vrot.lane.b32.xlu0 %v2655_v19, %s2381_s15 }
 0x27d   :  { %v681_v36 = vadd.f32 %v680_v35, %v488_v9  ;;  %1059 = vrot.lane.b32.xlu2 %v1056_v28, %s2381_s15  ;;  %1015 = vmatmul.bf16.vlgmr.msra.gmra.mxu0 %v721_v24 }
 0x27e   :  { %v715_v40 = vmax.f32 %v667_v33, 0.0  ;;  %1029 = vmatmul.bf16.vlgmr.msra.gmra.mxu1 %v722_v26 }
 0x27f   :  { %v716_v32 = vmax.f32 %v681_v36, 0.0 }
 0x280   :  { %v719_v41 = vpack.c.bf16 %v715_v40, %v711_v38 }
 0x281   :  { %v720_v42 = vpack.c.bf16 %v716_v32, %v712_v54  ;;  %v1522_v31 = vpop.permute.xlu1 %1521 }
 0x282   :  { %v1524_v56 = vmul.f32 %v1522_v31, %v2589_v63  ;;  %v1210_v44 = vpop.permute.xlu0 %1209  ;;  %987 = vmatmul.bf16.vlgmr.msrb.gmra.mxu2 %v719_v41 }
 0x283   :  { %v1212_v45 = vmul.f32 %v1210_v44, %v2591_v0  ;;  %1001 = vmatmul.bf16.vlgmr.msrb.gmra.mxu3 %v720_v42 }
 0x284   :  { %1527 = vrot.lane.b32.xlu0 %v1524_v56, %s2381_s15 }
 0x285   :  { %1215 = vrot.lane.b32.xlu2 %v1212_v45, %s2381_s15 }
 0x28a   :  { %v1444_v47 = vpop.permute.xlu0 %1443 }
 0x28b   :  { %v1446_v27 = vmul.f32 %v1444_v47, %v2601_v4 }
 0x28d   :  { %1449 = vrot.lane.b32.xlu2 %v1446_v27, %s2381_s15 }
 0x2c7   :  { %v1136_v48 = vpop.permute.xlu2 %1135 }
 0x2c8   :  { %v1058_v49 = vpop.permute.xlu1 %1057  ;;  %v1139_v0 = vmul.f32 %v1136_v48, %v2628_v53 }
 0x2c9   :  { %v1061_v39 = vmul.f32 %v1058_v49, %v2610_v20 }
 0x2cb   :  { %1063 = vrot.lane.b32.xlu0 %v1061_v39, %s2385_s3 }
 0x2cf   :  { %v1370_v63 = vpop.permute.xlu2 %1369 }
 0x2d0   :  { %v1292_v50 = vpop.permute.xlu1 %1291  ;;  %v1373_v57 = vmul.f32 %v1370_v63, %v2643_v62 }
 0x2d1   :  { %v1295_v52 = vmul.f32 %v1292_v50, %v2615_v43 }
 0x2d3   :  { %1297 = vrot.lane.b32.xlu2 %v1295_v52, %s2385_s3  ;;  %1141 = vrot.lane.b32.xlu0 %v1139_v0, %s2385_s3 }
 0x2d7   :  { %v1060_v34 = vpop.permute.xlu2 %1059 }
 0x2d8   :  { %v1062_v4 = vmul.f32 %v1060_v34, %v1056_v28  ;;  %v1138_v21 = vpop.permute.xlu1 %1137 }
 0x2d9   :  { %v1140_v43 = vmul.f32 %v1138_v21, %v2620_v29 }
 0x2db   :  { %1375 = vrot.lane.b32.xlu0 %v1373_v57, %s2385_s3  ;;  %1065 = vrot.lane.b32.xlu2 %v1062_v4, %s2385_s3 }
 0x2de   :  { %v1214_v20 = vpop.permute.xlu0 %1213 }
 0x2df   :  { %v1217_v58 = vmul.f32 %v1214_v20, %v2625_v51  ;;  %v1216_v37 = vpop.permute.xlu2 %1215 }
 0x2e0   :  { %v1218_v53 = vmul.f32 %v1216_v37, %v1212_v45  ;;  %v1372_v59 = vpop.permute.xlu1 %1371 }
 0x2e1   :  { %1219 = vrot.lane.b32.xlu1 %v1217_v58, %s2385_s3  ;;  %v1374_v2 = vmul.f32 %v1372_v59, %v2631_v55 }
 0x2e3   :  { %1143 = vrot.lane.b32.xlu2 %v1140_v43, %s2385_s3  ;;  %1221 = vrot.lane.b32.xlu0 %v1218_v53, %s2385_s3 }
 0x2e6   :  { %v1448_v25 = vpop.permute.xlu0 %1447 }
 0x2e7   :  { %v1451_v61 = vmul.f32 %v1448_v25, %v2640_v60  ;;  %v1450_v62 = vpop.permute.xlu2 %1449 }
 0x2e8   :  { %v1452_v1 = vmul.f32 %v1450_v62, %v1446_v27  ;;  %v1526_v29 = vpop.permute.xlu1 %1525 }
 0x2e9   :  { %1453 = vrot.lane.b32.xlu1 %v1451_v61, %s2385_s3  ;;  %v1529_v7 = vmul.f32 %v1526_v29, %v2646_v3 }
 0x2eb   :  { %1377 = vrot.lane.b32.xlu2 %v1374_v2, %s2385_s3  ;;  %1455 = vrot.lane.b32.xlu0 %v1452_v1, %s2385_s3 }
 0x2ee   :  { %v1294_v51 = vpop.permute.xlu0 %1293 }
 0x2ef   :  { %v1296_v6 = vmul.f32 %v1294_v51, %v2655_v19 }
 0x2f1   :  { %1299 = vrot.lane.b32.xlu1 %v1296_v6, %s2385_s3 }
 0x2f3   :  { %1531 = vrot.lane.b32.xlu2 %v1529_v7, %s2385_s3 }
 0x2f6   :  { %v1528_v60 = vpop.permute.xlu0 %1527 }
 0x2f7   :  { %v1530_v16 = vmul.f32 %v1528_v60, %v1524_v56 }
 0x2f9   :  { %1533 = vrot.lane.b32.xlu1 %v1530_v16, %s2385_s3 }
 0x32d   :  { %v1298_v55 = vpop.permute.xlu2 %1297 }
 0x32e   :  { %v1301_v15 = vmul.f32 %v1298_v55, %v1295_v52 }
 0x330   :  { %1303 = vrot.lane.b32.xlu0 %v1301_v15, %s2388_s27 }
 0x335   :  { %v1066_v46 = vpop.permute.xlu2 %1065 }
 0x336   :  { %v2692_v8 = vmul.f32 %v1066_v46, %v1062_v4 }
 0x338   :  { %1071 = vrot.lane.b32.xlu0 %v2692_v8, %s2388_s27 }
 0x33d   :  { %v1064_v9 = vpop.permute.xlu0 %1063  ;;  %v1144_v3 = vpop.permute.xlu2 %1143 }
 0x33e   :  { %v1067_v10 = vmul.f32 %v1064_v9, %v1061_v39  ;;  %v1146_v11 = vmul.f32 %v1144_v3, %v1140_v43 }
 0x340   :  { %1069 = vrot.lane.b32.xlu1 %v1067_v10, %s2388_s27  ;;  %1149 = vrot.lane.b32.xlu0 %v1146_v11, %s2388_s27 }
 0x345   :  { %v1142_v5 = vpop.permute.xlu0 %1141  ;;  %v1378_v12 = vpop.permute.xlu2 %1377 }
 0x346   :  { %v1145_v13 = vmul.f32 %v1142_v5, %v1139_v0  ;;  %v1380_v14 = vmul.f32 %v1378_v12, %v1374_v2 }
 0x348   :  { %1147 = vrot.lane.b32.xlu1 %v1145_v13, %s2388_s27  ;;  %1383 = vrot.lane.b32.xlu0 %v1380_v14, %s2388_s27 }
 0x34d   :  { %v1376_v17 = vpop.permute.xlu0 %1375  ;;  %v1532_v18 = vpop.permute.xlu2 %1531 }
 0x34e   :  { %v1379_v19 = vmul.f32 %v1376_v17, %v1373_v57  ;;  %v1535_v22 = vmul.f32 %v1532_v18, %v1529_v7 }
 0x350   :  { %1381 = vrot.lane.b32.xlu1 %v1379_v19, %s2388_s27  ;;  %1537 = vrot.lane.b32.xlu0 %v1535_v22, %s2388_s27 }
 0x353   :  { %v1220_v23 = vpop.permute.xlu1 %1219 }
 0x354   :  { %v1223_v24 = vmul.f32 %v1220_v23, %v1217_v58 }
 0x355   :  { %v1222_v26 = vpop.permute.xlu0 %1221 }
 0x356   :  { %v1224_v28 = vmul.f32 %v1222_v26, %v1218_v53  ;;  %1225 = vrot.lane.b32.xlu2 %v1223_v24, %s2388_s27 }
 0x358   :  { %1227 = vrot.lane.b32.xlu1 %v1224_v28, %s2388_s27 }
 0x35b   :  { %v1454_v30 = vpop.permute.xlu1 %1453 }
 0x35c   :  { %v1457_v33 = vmul.f32 %v1454_v30, %v1451_v61 }
 0x35d   :  { %v1456_v35 = vpop.permute.xlu0 %1455 }
 0x35e   :  { %v1458_v36 = vmul.f32 %v1456_v35, %v1452_v1  ;;  %1459 = vrot.lane.b32.xlu2 %v1457_v33, %s2388_s27 }
 0x360   :  { %1461 = vrot.lane.b32.xlu1 %v1458_v36, %s2388_s27 }
 0x363   :  { %v1300_v38 = vpop.permute.xlu1 %1299 }
 0x364   :  { %v1302_v40 = vmul.f32 %v1300_v38, %v1296_v6 }
 0x366   :  { %1305 = vrot.lane.b32.xlu2 %v1302_v40, %s2388_s27 }
 0x36b   :  { %v1534_v54 = vpop.permute.xlu1 %1533 }
 0x36c   :  { %v1536_v32 = vmul.f32 %v1534_v54, %v1530_v16 }
 0x36e   :  { %1539 = vrot.lane.b32.xlu2 %v1536_v32, %s2388_s27 }
 0x3a2   :  { %v1304_v41 = vpop.permute.xlu0 %1303 }
 0x3a3   :  { %v1307_v42 = vmul.f32 %v1304_v41, %v1301_v15 }
 0x3a5   :  { %1309 = vrot.lane.b32.xlu0 %v1307_v42, %s2376_s22 }
 0x3aa   :  { %v1072_v31 = vpop.permute.xlu0 %1071 }
 0x3ab   :  { %v1074_v58 = vmul.f32 %v1072_v31, %v2692_v8 }
 0x3b0   :  { %v1226_v27 = vpop.permute.xlu2 %1225 }
 0x3b1   :  { %v1229_v50 = vmul.f32 %v1226_v27, %v1223_v24 }
 0x3b2   :  { %v1070_v56 = vpop.permute.xlu1 %1069  ;;  %v1150_v44 = vpop.permute.xlu0 %1149 }
 0x3b3   :  { %v1073_v45 = vmul.f32 %v1070_v56, %v1067_v10  ;;  %v2709_v47 = vmul.f32 %v1150_v44, %v1146_v11 }
 0x3b5   :  { %1075 = vrot.lane.b32.xlu2 %v1073_v45, %s2376_s22  ;;  %1155 = vrot.lane.b32.xlu0 %v2709_v47, %s2376_s22 }
 0x3b8   :  { %v1460_v0 = vpop.permute.xlu2 %1459 }
 0x3b9   :  { %v1463_v21 = vmul.f32 %v1460_v0, %v1457_v33 }
 0x3ba   :  { %v1148_v48 = vpop.permute.xlu1 %1147  ;;  %v1384_v49 = vpop.permute.xlu0 %1383 }
 0x3bb   :  { %v1151_v39 = vmul.f32 %v1148_v48, %v1145_v13  ;;  %v2714_v63 = vmul.f32 %v1384_v49, %v1380_v14 }
 0x3bd   :  { %1153 = vrot.lane.b32.xlu1 %v1151_v39, %s2376_s22  ;;  %1389 = vrot.lane.b32.xlu0 %v2714_v63, %s2376_s22 }
 0x3be   :  { %1231 = vrot.lane.b32.xlu2 %v1229_v50, %s2376_s22 }
 0x3c0   :  { %v1306_v20 = vpop.permute.xlu2 %1305 }
 0x3c1   :  { %v1308_v37 = vmul.f32 %v1306_v20, %v1302_v40 }
 0x3c2   :  { %v1382_v52 = vpop.permute.xlu1 %1381  ;;  %v1538_v34 = vpop.permute.xlu0 %1537 }
 0x3c3   :  { %v1385_v4 = vmul.f32 %v1382_v52, %v1379_v19  ;;  %v1541_v57 = vmul.f32 %v1538_v34, %v1535_v22 }
 0x3c5   :  { %1387 = vrot.lane.b32.xlu1 %v1385_v4, %s2376_s22  ;;  %1543 = vrot.lane.b32.xlu0 %v1541_v57, %s2376_s22 }
 0x3c6   :  { %1465 = vrot.lane.b32.xlu2 %v1463_v21, %s2376_s22 }
 0x3c8   :  { %v1540_v43 = vpop.permute.xlu2 %1539 }
 0x3c9   :  { %v1542_v25 = vmul.f32 %v1540_v43, %v1536_v32 }
 0x3ca   :  { %v1228_v53 = vpop.permute.xlu1 %1227 }
 0x3cb   :  { %v1230_v59 = vmul.f32 %v1228_v53, %v1224_v28 }
 0x3cd   :  { %1077 = vrot.lane.b32.xlu1 %v1074_v58, %s2376_s22 }
 0x3ce   :  { %1311 = vrot.lane.b32.xlu2 %v1308_v37, %s2376_s22 }
 0x3d2   :  { %v1462_v61 = vpop.permute.xlu1 %1461 }
 0x3d3   :  { %v1464_v62 = vmul.f32 %v1462_v61, %v1458_v36 }
 0x3d5   :  { %1233 = vrot.lane.b32.xlu1 %v1230_v59, %s2376_s22 }
 0x3d6   :  { %1545 = vrot.lane.b32.xlu2 %v1542_v25, %s2376_s22 }
 0x3dd   :  { %1467 = vrot.lane.b32.xlu1 %v1464_v62, %s2376_s22  ;;  %s2393_s22 = smov [#allocation17]  }
 0x3de   :  { %s1587_s11 = sshll.u32 %s2393_s22, 4  ;;  %s1588_s11 = int_to_ptr.vmem [resolvable:$true] %s1587_s11 }
 0x40f   :  { %v1076_v1 = vpop.permute.xlu2 %1075 }
 0x410   :  { %v1079_v2 = vmul.f32 %v1076_v1, %v1073_v45 }
 0x412   :  { %1081 = vrot.lane.b32.xlu0 %v1079_v2, %s2390_s8 }
 0x417   :  { %v1310_v29 = vpop.permute.xlu0 %1309 }
 0x418   :  { %v1313_v51 = vmul.f32 %v1310_v29, %v1307_v42  ;;  %v1232_v6 = vpop.permute.xlu2 %1231 }
 0x419   :  { %v1235_v7 = vmul.f32 %v1232_v6, %v1229_v50 }
 0x41a   :  { %1315 = vrot.lane.b32.xlu2 %v1313_v51, %s2390_s8 }
 0x41b   :  { %1237 = vrot.lane.b32.xlu1 %v1235_v7, %s2390_s8 }
 0x420   :  { %v1466_v60 = vpop.permute.xlu2 %1465 }
 0x421   :  { %v1469_v16 = vmul.f32 %v1466_v60, %v1463_v21 }
 0x423   :  { %1471 = vrot.lane.b32.xlu1 %v1469_v16, %s2390_s8 }
 0x427   :  { %v1156_v13 = vpop.permute.xlu0 %1155 }
 0x428   :  { %v1312_v55 = vpop.permute.xlu2 %1311  ;;  %v1158_v17 = vmul.f32 %v1156_v13, %v2709_v47 }
 0x429   :  { %v1314_v15 = vmul.f32 %v1312_v55, %v1308_v37 }
 0x42b   :  { %1317 = vrot.lane.b32.xlu1 %v1314_v15, %s2390_s8 }
 0x42f   :  { %v1154_v46 = vpop.permute.xlu1 %1153  ;;  %v1390_v19 = vpop.permute.xlu0 %1389 }
 0x430   :  { %v1157_v8 = vmul.f32 %v1154_v46, %v1151_v39  ;;  %v1546_v9 = vpop.permute.xlu2 %1545  ;;  %v1392_v23 = vmul.f32 %v1390_v19, %v2714_v63 }
 0x431   :  { %v1548_v3 = vmul.f32 %v1546_v9, %v1542_v25 }
 0x432   :  { %1159 = vrot.lane.b32.xlu0 %v1157_v8, %s2390_s8 }
 0x433   :  { %1551 = vrot.lane.b32.xlu1 %v1548_v3, %s2390_s8 }
 0x437   :  { %v1388_v10 = vpop.permute.xlu1 %1387  ;;  %v1544_v26 = vpop.permute.xlu0 %1543 }
 0x438   :  { %v1391_v11 = vmul.f32 %v1388_v10, %v1385_v4  ;;  %v1547_v28 = vmul.f32 %v1544_v26, %v1541_v57 }
 0x43a   :  { %1393 = vrot.lane.b32.xlu0 %v1391_v11, %s2390_s8 }
 0x43f   :  { %v1078_v5 = vpop.permute.xlu1 %1077 }
 0x440   :  { %v1080_v12 = vmul.f32 %v1078_v5, %v1074_v58  ;;  %v2392_v58 = vmov 0  }
 0x441   :  { %2029 = vset.pattern.permute.xlu2 %v2392_v58  ;;  %2031 = vset.pattern.permute.xlu1 %v2392_v58 }
 0x442   :  { %1083 = vrot.lane.b32.xlu2 %v1080_v12, %s2390_s8  ;;  %2030 = vset.pattern.permute.xlu0 %v2392_v58 }
 0x447   :  { %v1234_v14 = vpop.permute.xlu1 %1233 }
 0x448   :  { %v1236_v18 = vmul.f32 %v1234_v14, %v1230_v59 }
 0x44a   :  { %1161 = vrot.lane.b32.xlu2 %v1158_v17, %s2390_s8  ;;  %1239 = vrot.lane.b32.xlu0 %v1236_v18, %s2390_s8 }
 0x44f   :  { %v1468_v22 = vpop.permute.xlu1 %1467 }
 0x450   :  { %v1470_v24 = vmul.f32 %v1468_v22, %v1464_v62 }
 0x452   :  { %1395 = vrot.lane.b32.xlu2 %v1392_v23, %s2390_s8  ;;  %1473 = vrot.lane.b32.xlu0 %v1470_v24, %s2390_s8 }
 0x45a   :  { %1549 = vrot.lane.b32.xlu2 %v1547_v28, %s2390_s8 }
 0x474   :  { %v1316_v30 = vpop.permute.xlu2 %1315 }
 0x475   :  { %v1319_v33 = vmul.f32 %v1316_v30, %v1313_v51 }
 0x477   :  { %1321 = vrot.lane.b32.xlu2 %v1319_v33, %s2391_s1 }
 0x484   :  { %v1082_v35 = vpop.permute.xlu0 %1081 }
 0x485   :  { %v1085_v36 = vmul.f32 %v1082_v35, %v1079_v2 }
 0x487   :  { %1087 = vrot.lane.b32.xlu1 %v1085_v36, %s2391_s1 }
 0x48d   :  { %v1238_v38 = vpop.permute.xlu1 %1237 }
 0x48e   :  { %v1241_v40 = vmul.f32 %v1238_v38, %v1235_v7 }
 0x490   :  { %1243 = vrot.lane.b32.xlu1 %v1241_v40, %s2391_s1 }
 0x495   :  { %v1472_v54 = vpop.permute.xlu1 %1471 }
 0x496   :  { %v1475_v32 = vmul.f32 %v1472_v54, %v1469_v16 }
 0x498   :  { %1477 = vrot.lane.b32.xlu1 %v1475_v32, %s2391_s1 }
 0x49c   :  { %v1084_v41 = vpop.permute.xlu2 %1083 }
 0x49d   :  { %v1318_v42 = vpop.permute.xlu1 %1317  ;;  %v1086_v52 = vmul.f32 %v1084_v41, %v1080_v12 }
 0x49e   :  { %v2749_v31 = vmul.f32 %v1318_v42, %v1314_v15 }
 0x4a0   :  { %1323 = vrot.lane.b32.xlu1 %v2749_v31, %s2391_s1 }
 0x4a4   :  { %v1160_v56 = vpop.permute.xlu0 %1159  ;;  %v1162_v44 = vpop.permute.xlu2 %1161 }
 0x4a5   :  { %v1163_v45 = vmul.f32 %v1160_v56, %v1157_v8  ;;  %v1552_v47 = vpop.permute.xlu1 %1551  ;;  %v1164_v27 = vmul.f32 %v1162_v44, %v1158_v17 }
 0x4a6   :  { %v2753_v48 = vmul.f32 %v1552_v47, %v1548_v3 }
 0x4a7   :  { %1165 = vrot.lane.b32.xlu0 %v1163_v45, %s2391_s1  ;;  %1167 = vrot.lane.b32.xlu2 %v1164_v27, %s2391_s1 }
 0x4a8   :  { %1557 = vrot.lane.b32.xlu1 %v2753_v48, %s2391_s1 }
 0x4ac   :  { %v1394_v49 = vpop.permute.xlu0 %1393  ;;  %v1396_v39 = vpop.permute.xlu2 %1395 }
 0x4ad   :  { %v1397_v63 = vmul.f32 %v1394_v49, %v1391_v11  ;;  %v1398_v50 = vmul.f32 %v1396_v39, %v1392_v23 }
 0x4af   :  { %1399 = vrot.lane.b32.xlu0 %v1397_v63, %s2391_s1  ;;  %1401 = vrot.lane.b32.xlu2 %v1398_v50, %s2391_s1 }
 0x4b4   :  { %v1550_v0 = vpop.permute.xlu2 %1549 }
 0x4b5   :  { %v2761_v34 = vmul.f32 %v1550_v0, %v1547_v28 }
 0x4b7   :  { %1089 = vrot.lane.b32.xlu0 %v1086_v52, %s2391_s1  ;;  %1555 = vrot.lane.b32.xlu2 %v2761_v34, %s2391_s1 }
 0x4bc   :  { %v1240_v4 = vpop.permute.xlu0 %1239 }
 0x4bd   :  { %v2766_v57 = vmul.f32 %v1240_v4, %v1236_v18  ;;  %v1002_v4 = vpop.f32.mrf.mxu3 }
 0x4bf   :  { %1245 = vrot.lane.b32.xlu0 %v2766_v57, %s2391_s1 }
 0x4c4   :  { %v1474_v21 = vpop.permute.xlu0 %1473 }
 0x4c5   :  { %v2770_v20 = vmul.f32 %v1474_v21, %v1470_v24 }
 0x4c7   :  { %1479 = vrot.lane.b32.xlu0 %v2770_v20, %s2391_s1 }
 0x4d1   :  { %v1322_v62 = vpop.permute.xlu2 %1321 }
 0x4d2   :  { %v1325_v2 = vmul.f32 %v1322_v62, %v1319_v33  ;;  %v1004_v62 = vpop.f32.mrf.mxu3 }
 0x4d4   :  { %v1327_v29 = vmin.f32 %v1325_v2, 3e+38 }
 0x4f9   :  { %v1088_v37 = vpop.permute.xlu1 %1087 }
 0x4fa   :  { %v1091_v53 = vmul.f32 %v1088_v37, %v1085_v36  ;;  %v1016_v37 = vpop.f32.mrf.mxu0 }
 0x4fc   :  { %v1093_v43 = vmin.f32 %v1091_v53, 3e+38 }
 0x4fe   :  { %2093 = vrcp.f32 %v1093_v43 }
 0x501   :  { %v1168_v46 = vpop.permute.xlu2 %1167 }
 0x502   :  { %v1244_v59 = vpop.permute.xlu1 %1243  ;;  %v1170_v13 = vmul.f32 %v1168_v46, %v1164_v27 }
 0x503   :  { %v1247_v25 = vmul.f32 %v1244_v59, %v1241_v40  ;;  %v1030_v59 = vpop.f32.mrf.mxu1 }
 0x504   :  { %v2094_v61 = vpop.eup %2093  ;;  %v1172_v24 = vmin.f32 %v1170_v13, 3e+38 }
 0x505   :  { %v1249_v1 = vmin.f32 %v1247_v25, 3e+38  ;;  %1100 = vperm.xlu2 %2029, %v2094_v61  }
 0x507   :  { %2095 = vrcp.f32 %v1249_v1  ;;  %v2050_v1 = vld [vmem:[#allocation16] ss:$0 sm:$0xff] }
 0x508   :  { %2097 = vrcp.f32 %v1327_v29 }
 0x509   :  { %v1402_v14 = vpop.permute.xlu2 %1401 }
 0x50a   :  { %v1478_v7 = vpop.permute.xlu1 %1477  ;;  %v1404_v28 = vmul.f32 %v1402_v14, %v1398_v50 }
 0x50b   :  { %v1481_v15 = vmul.f32 %v1478_v7, %v1475_v32 }
 0x50c   :  { %v1406_v35 = vmin.f32 %v1404_v28, 3e+38 }
 0x50d   :  { %v2096_v51 = vpop.eup %2095  ;;  %v1483_v9 = vmin.f32 %v1481_v15, 3e+38 }
 0x50e   :  { %1256 = vperm.xlu1 %2031, %v2096_v51   ;;  %v2098_v6 = vpop.eup %2097 }
 0x511   :  { %v1556_v40 = vpop.permute.xlu2 %1555 }
 0x512   :  { %v1324_v8 = vpop.permute.xlu1 %1323  ;;  %v1559_v56 = vmul.f32 %v1556_v40, %v2761_v34 }
 0x513   :  { %v1326_v12 = vmul.f32 %v1324_v8, %v2749_v31 }
 0x514   :  { %v1561_v44 = vmin.f32 %v1559_v56, 3e+38 }
 0x515   :  { %v1328_v17 = vmin.f32 %v1326_v12, 3e+38 }
 0x516   :  { %1334 = vperm.xlu1 %2031, %v2098_v6  }
 0x519   :  { %v1166_v60 = vpop.permute.xlu0 %1165 }
 0x51a   :  { %v1169_v16 = vmul.f32 %v1166_v60, %v1163_v45  ;;  %v1558_v19 = vpop.permute.xlu1 %1557  ;;  %v2054_v60 = vld [vmem:[#allocation16 + $0x1] ss:$0 sm:$0xff] }
 0x51b   :  { %v1560_v33 = vmul.f32 %v1558_v19, %v2753_v48 }
 0x51c   :  { %v1171_v55 = vmin.f32 %v1169_v16, 3e+38  ;;  %v1018_v16 = vpop.f32.mrf.mxu0 }
 0x51d   :  { %v1562_v36 = vmin.f32 %v1560_v33, 3e+38  ;;  %v2055_v33 = vld [vmem:[#allocation16 + $0x5] ss:$0 sm:$0xff] }
 0x51e   :  { %2099 = vrcp.f32 %v1171_v55 }
 0x51f   :  { %2101 = vrcp.f32 %v1483_v9  ;;  %v1032_v9 = vpop.f32.mrf.mxu1 }
 0x521   :  { %v1400_v3 = vpop.permute.xlu0 %1399 }
 0x522   :  { %v1403_v10 = vmul.f32 %v1400_v3, %v1397_v63 }
 0x524   :  { %v2100_v11 = vpop.eup %2099  ;;  %v1405_v5 = vmin.f32 %v1403_v10, 3e+38  ;;  %v2051_v10 = vld [vmem:[#allocation16 + $0x2] ss:$0 sm:$0xff] }
 0x525   :  { %1178 = vperm.xlu0 %2030, %v2100_v11   ;;  %v2102_v23 = vpop.eup %2101 }
 0x526   :  { %2103 = vrcp.f32 %v1405_v5 }
 0x527   :  { %2105 = vrcp.f32 %v1328_v17 }
 0x529   :  { %v1090_v18 = vpop.permute.xlu0 %1089 }
 0x52a   :  { %v1092_v22 = vmul.f32 %v1090_v18, %v1086_v52  ;;  %v988_v52 = vpop.f32.mrf.mxu2  ;;  %v2052_v18 = vld [vmem:[#allocation16 + $0x3] ss:$0 sm:$0xff] }
 0x52c   :  { %v2104_v26 = vpop.eup %2103  ;;  %v1094_v30 = vmin.f32 %v1092_v22, 3e+38 }
 0x52d   :  { %1490 = vperm.xlu0 %2030, %v2102_v23   ;;  %1412 = vperm.xlu2 %2029, %v2104_v26   ;;  %v2106_v32 = vpop.eup %2105 }
 0x52e   :  { %2107 = vrcp.f32 %v1094_v30  ;;  %v2053_v30 = vld [vmem:[#allocation16 + $0x4] ss:$0 sm:$0xff] }
 0x52f   :  { %2109 = vrcp.f32 %v1172_v24 }
 0x530   :  { %2111 = vrcp.f32 %v1406_v35 }
 0x531   :  { %v1246_v38 = vpop.permute.xlu0 %1245  ;;  %2113 = vrcp.f32 %v1562_v36 }
 0x532   :  { %v1248_v54 = vmul.f32 %v1246_v38, %v2766_v57  ;;  %v172_v57 = vld [vmem:[#allocation14 + $0x4] ss:$0 sm:$0xff]  ;;  %v990_v53 = vpop.f32.mrf.mxu2 }
 0x533   :  { %v991_v61 = vadd.f32 %v990_v53, %v172_v57 }
 0x534   :  { %v2108_v41 = vpop.eup %2107  ;;  %v1250_v42 = vmin.f32 %v1248_v54, 3e+38 }
 0x535   :  { %v2110_v31 = vpop.eup %2109  ;;  %1339 = vperm.xlu0 %2030, %v2106_v32   ;;  %1105 = vperm.xlu1 %2031, %v2108_v41   ;;  %v1005_v6 = vadd.f32 %v1004_v62, %v991_v61  ;;  %v2056_v32 = vld [vmem:[#allocation16 + $0x6] ss:$0 sm:$0xff] }
 0x536   :  { %2115 = vrcp.f32 %v1250_v42  ;;  %1183 = vperm.xlu2 %2029, %v2110_v31   ;;  %v2112_v47 = vpop.eup %2111 }
 0x537   :  { %v2114_v48 = vpop.eup %2113  ;;  %2117 = vrcp.f32 %v1561_v44  ;;  %v1019_v55 = vadd.f32 %v1018_v16, %v1005_v6 }
 0x539   :  { %v1480_v45 = vpop.permute.xlu0 %1479  ;;  %v1033_v13 = vadd.f32 %v1032_v9, %v1019_v55 }
 0x53a   :  { %v1482_v27 = vmul.f32 %v1480_v45, %v2770_v20  ;;  %v989_v20 = vadd.f32 %v988_v52, %v172_v57 }
 0x53c   :  { %v2116_v49 = vpop.eup %2115  ;;  %v1484_v39 = vmin.f32 %v1482_v27, 3e+38  ;;  %v1003_v25 = vadd.f32 %v1002_v4, %v989_v20 }
 0x53d   :  { %1573 = vperm.xlu0 %2030, %v2114_v48   ;;  %1417 = vperm.xlu1 %2031, %v2112_v47   ;;  %v2118_v63 = vpop.eup %2117 }
 0x53e   :  { %2119 = vrcp.f32 %v1484_v39  ;;  %1261 = vperm.xlu2 %2029, %v2116_v49   ;;  %v1017_v51 = vadd.f32 %v1016_v37, %v1003_v25 }
 0x540   :  { %v1031_v15 = vadd.f32 %v1030_v59, %v1017_v51 }
 0x544   :  { %v2120_v50 = vpop.eup %2119 }
 0x545   :  { %1568 = vperm.xlu1 %2031, %v2118_v63  }
 0x546   :  { %1495 = vperm.xlu2 %2029, %v2120_v50  }
 0x55f   :  { %v1101_v0 = vpop.permute.xlu2 %1100 }
 0x560   :  { %v1109_v7 = vmul.f32 %v2050_v1, %v1101_v0 }
 0x562   :  { %v1111_v3 = vadd.f32 %v1109_v7, %v1031_v15 }
 0x580   :  { %v1257_v21 = vpop.permute.xlu1 %1256 }
 0x581   :  { %v1265_v17 = vmul.f32 %v2051_v10, %v1257_v21 }
 0x587   :  { %v1413_v34 = vpop.permute.xlu2 %1412 }
 0x588   :  { %v1335_v2 = vpop.permute.xlu1 %1334  ;;  %v1421_v56 = vmul.f32 %v2053_v30, %v1413_v34 }
 0x589   :  { %v1343_v28 = vmul.f32 %v2052_v18, %v1335_v2 }
 0x590   :  { %v1184_v43 = vpop.permute.xlu2 %1183 }
 0x591   :  { %v1188_v19 = vmul.f32 %v2054_v60, %v1184_v43 }
 0x597   :  { %v1179_v58 = vpop.permute.xlu0 %1178 }
 0x598   :  { %v1187_v46 = vmul.f32 %v2054_v60, %v1179_v58  ;;  %v1262_v8 = vpop.permute.xlu2 %1261 }
 0x599   :  { %v1266_v24 = vmul.f32 %v2051_v10, %v1262_v8 }
 0x59a   :  { %v1189_v12 = vadd.f32 %v1187_v46, %v1111_v3 }
 0x59c   :  { %v1267_v23 = vadd.f32 %v1265_v17, %v1189_v12 }
 0x59e   :  { %v1345_v54 = vadd.f32 %v1343_v28, %v1267_v23 }
 0x59f   :  { %v1491_v29 = vpop.permute.xlu0 %1490 }
 0x5a0   :  { %v1496_v38 = vpop.permute.xlu2 %1495  ;;  %v1423_v47 = vadd.f32 %v1421_v56, %v1345_v54  ;;  %v1499_v27 = vmul.f32 %v2055_v33, %v1491_v29 }
 0x5a1   :  { %v1500_v44 = vmul.f32 %v2055_v33, %v1496_v38 }
 0x5a2   :  { %v1501_v50 = vadd.f32 %v1499_v27, %v1423_v47 }
 0x5a7   :  { %v1340_v11 = vpop.permute.xlu0 %1339  ;;  %v1106_v5 = vpop.permute.xlu1 %1105 }
 0x5a8   :  { %v1110_v14 = vmul.f32 %v2050_v1, %v1106_v5  ;;  %v1344_v35 = vmul.f32 %v2052_v18, %v1340_v11 }
 0x5aa   :  { %v1112_v22 = vadd.f32 %v1110_v14, %v1033_v13 }
 0x5ac   :  { %v1190_v26 = vadd.f32 %v1188_v19, %v1112_v22 }
 0x5ae   :  { %v1268_v36 = vadd.f32 %v1266_v24, %v1190_v26 }
 0x5af   :  { %v1418_v40 = vpop.permute.xlu1 %1417  ;;  %v1574_v31 = vpop.permute.xlu0 %1573 }
 0x5b0   :  { %v1346_v41 = vadd.f32 %v1344_v35, %v1268_v36  ;;  %v1422_v42 = vmul.f32 %v2053_v30, %v1418_v40  ;;  %v1578_v48 = vmul.f32 %v2056_v32, %v1574_v31 }
 0x5b2   :  { %v1424_v45 = vadd.f32 %v1422_v42, %v1346_v41 }
 0x5b4   :  { %v1502_v49 = vadd.f32 %v1500_v44, %v1424_v45 }
 0x5b6   :  { %v1580_v39 = vadd.f32 %v1578_v48, %v1502_v49 }
 0x5b7   :  { %v1569_v63 = vpop.permute.xlu1 %1568 }
 0x5b8   :  { %1582 = vst [vmem:[#allocation17 + $0x8] sm:$0xff] %v1580_v39  ;;  %v1577_v0 = vmul.f32 %v2056_v32, %v1569_v63 }
 0x5ba   :  { %v1579_v52 = vadd.f32 %v1577_v0, %v1501_v50 }
 0x5bc   :  { %1581 = vst [vmem:[#allocation17] sm:$0xff] %v1579_v52 }
 0x5bd   :  { %1595 = dma.vmem_to_hbm [thread:$0]  %s1588_s11, 256, %s1590_s13, [#allocation4], %s2387_s5, %s2387_s5, %s2388_s27  }
 0x5be   :  { %2371 = dma.done.wait [#allocation4], 256  }
 0x5bf   :  { %2372 = vsyncadd [#allocation4], 4294967040 }
 0x5c0   :  { %1600 = vsyncpa [#allocation3], 1 }
 0x5c1   :  { %1601 = vsyncpa [#allocation6], 1 }
 0x5c2   :  { %1602 = vsyncpa [#allocation9], 1 }
 0x5c3   :  { %1603 = vsyncpa [#allocation12], 1 }
 0x5c4   :  { %1604 = vsyncpa [#allocation15], 1 }
 0x5c5   :  { %1605 = vsyncpa [#allocation4], 1 }

</bundles_post_ra>
